<compile_context>
chip_gen: v7x
topology: tpu7x:2x2x1
jax: 0.10.0
libtpu: 0.0.40
codegen_flags: <defaults>
</compile_context>

<pallas_src>
import math

import jax
import jax.numpy as jnp
from jax import lax
from jax.experimental import pallas as pl
from jax.experimental.pallas import tpu as pltpu  # noqa: F401  (kept for TPU-specific tuning hooks)

# ---------------- model hyper-parameters (small, consistent with the module) --
NUM_LAYERS = 2
D_MODEL = 32
NUM_HEADS = 4
DEPTH = D_MODEL // NUM_HEADS
D_FF = 64
BATCH = 2
SEQ = 8
BS = BATCH * SEQ
LN_EPS = 1e-5
OUT_PAD = 128   # lane-dense padded width for the final (d_model -> 1) projection
NEG_INF = -1e30


# ------------------------------ fused Pallas kernel ----------------------------
def transformer_kernel(x_ref, pe_ref, mask_ref, wqkv_ref, wo_ref, w1_ref,
                       w2_ref, vec_ref, wf_ref, bf_ref, o_ref):
    f32 = jnp.float32
    bf16 = jnp.bfloat16

    # positional encoding: load (SEQ, D) once, tile across batch in-kernel
    pe = jnp.concatenate([pe_ref[...]] * BATCH, axis=0)        # (BS, D)
    x = x_ref[...].astype(f32) + pe                            # (BS, D)

    mask = mask_ref[...]                                       # (BS, BS) block-diag

    inv_sqrt_depth = 1.0 / math.sqrt(DEPTH)

    for l in range(NUM_LAYERS):                                # static layer loop
        wqkv = wqkv_ref[l]                                     # (D, 3D)  bf16
        wo = wo_ref[l]                                         # (D, D)   bf16
        w1 = w1_ref[l]                                         # (D, Dff) bf16
        w2 = w2_ref[l]                                         # (Dff, D) bf16
        vec = vec_ref[l]                                       # (8, 96)  f32
        b_qkv = vec[0:1, :]                                    # (1, 96)
        b1 = vec[1:2, :D_FF]                                   # (1, 64)
        b_o = vec[2:3, :D_MODEL]                               # (1, 32)
        b2 = vec[3:4, :D_MODEL]
        g1 = vec[4:5, :D_MODEL]
        be1 = vec[5:6, :D_MODEL]
        g2 = vec[6:7, :D_MODEL]
        be2 = vec[7:8, :D_MODEL]

        # ---- fused Q/K/V projection: one (BS,D)x(D,3D) matmul -----------------
        qkv = jnp.dot(x.astype(bf16), wqkv,
                      preferred_element_type=f32) + b_qkv      # (BS, 3D) f32

        q_bf = qkv[:, :D_MODEL].astype(bf16)                   # (BS, D)
        kt_bf = qkv[:, D_MODEL:2 * D_MODEL].T.astype(bf16)     # (D, BS) — 1 transpose/layer
        v_bf = qkv[:, 2 * D_MODEL:].astype(bf16)               # (BS, D)

        # ---- multi-head attention: batch merged via block-diagonal mask -------
        attn = jnp.zeros((BS, D_MODEL), f32)
        for h in range(NUM_HEADS):                             # static head loop
            c0 = h * DEPTH
            qh = q_bf[:, c0:c0 + DEPTH]                        # (BS, dep)  bf16
            kth = kt_bf[c0:c0 + DEPTH, :]                      # (dep, BS)  bf16
            vh = v_bf[:, c0:c0 + DEPTH]                        # (BS, dep)  bf16

            s = jnp.dot(qh, kth, preferred_element_type=f32) * inv_sqrt_depth
            s = s + mask                                       # kill cross-batch
            s = s - jnp.max(s, axis=-1, keepdims=True)
            p = jnp.exp(s)
            p = p * pl.reciprocal(jnp.sum(p, axis=-1, keepdims=True),
                                  approx=True)                 # (BS, BS)
            ctx_h = jnp.dot(p.astype(bf16), vh,
                            preferred_element_type=f32)        # (BS, dep)
            # accumulate directly through the per-head slice of Wo — no scratch
            attn = attn + jnp.dot(ctx_h.astype(bf16), wo[c0:c0 + DEPTH, :],
                                  preferred_element_type=f32)  # (BS, D)
        attn = attn + b_o

        # ---- residual + LayerNorm 1 (dropout == identity) ----------------------
        h1 = x + attn
        mu1 = jnp.mean(h1, axis=-1, keepdims=True)
        var1 = jnp.mean((h1 - mu1) ** 2, axis=-1, keepdims=True)
        h1n = (h1 - mu1) * lax.rsqrt(var1 + LN_EPS) * g1 + be1

        # ---- feed-forward -------------------------------------------------------
        f = jnp.dot(h1n.astype(bf16), w1, preferred_element_type=f32) + b1
        f = jnp.maximum(f, 0.0)
        f = jnp.dot(f.astype(bf16), w2, preferred_element_type=f32) + b2

        # ---- residual + LayerNorm 2 --------------------------------------------
        h2 = h1n + f
        mu2 = jnp.mean(h2, axis=-1, keepdims=True)
        var2 = jnp.mean((h2 - mu2) ** 2, axis=-1, keepdims=True)
        x = (h2 - mu2) * lax.rsqrt(var2 + LN_EPS) * g2 + be2

    # ---- final projection to a lane-dense padded slab (result lives in lane 0)
    y = jnp.dot(x.astype(bf16), wf_ref[...],
                preferred_element_type=f32) + bf_ref[...]      # (BS, OUT_PAD)
    o_ref[...] = y.astype(o_ref.dtype)


# ------------------------------ wrapper -----------------------------------------
@jax.jit
def transformer_forward(x, pe, mask, wqkv, wo, w1, w2, vec, wf_pad, bf_pad):
    B, S, D = x.shape
    assert (B, S, D) == (BATCH, SEQ, D_MODEL), "kernel packed for fixed shapes"
    x2 = x.reshape(B * S, D)
    out = pl.pallas_call(
        transformer_kernel,
        out_shape=jax.ShapeDtypeStruct((B * S, OUT_PAD), jnp.float32),
    )(x2, pe, mask, wqkv, wo, w1, w2, vec, wf_pad, bf_pad)
    # slice the real (lane-0) column back out; cheap XLA-side op
    return out[:, :1].reshape(B, S, 1)


# --------------------------- parameter construction / packing -------------------
def make_pos_encoding(seq, d_model):
    position = jnp.arange(seq, dtype=jnp.float32)[:, None]
    div_term = jnp.exp(jnp.arange(0, d_model, 2, dtype=jnp.float32)
                       * (-math.log(10000.0) / d_model))
    pe = jnp.zeros((seq, d_model), dtype=jnp.float32)
    pe = pe.at[:, 0::2].set(jnp.sin(position * div_term))
    pe = pe.at[:, 1::2].set(jnp.cos(position * div_term))
    return pe


def make_block_mask(batch, seq):
    """(batch*seq, batch*seq) additive mask: 0 within a batch block, -1e30 across."""
    blk = jnp.arange(batch * seq) // seq
    same = blk[:, None] == blk[None, :]
    return jnp.where(same, 0.0, NEG_INF).astype(jnp.float32)


def init_params(key):
    layer_params = []
    for _ in range(NUM_LAYERS):
        keys = jax.random.split(key, 7)
        key = keys[0]
        p = {
            "wq": 0.05 * jax.random.normal(keys[1], (D_MODEL, D_MODEL), jnp.float32),
            "bq": jnp.zeros((1, D_MODEL), jnp.float32),
            "wk": 0.05 * jax.random.normal(keys[2], (D_MODEL, D_MODEL), jnp.float32),
            "bk": jnp.zeros((1, D_MODEL), jnp.float32),
            "wv": 0.05 * jax.random.normal(keys[3], (D_MODEL, D_MODEL), jnp.float32),
            "bv": jnp.zeros((1, D_MODEL), jnp.float32),
            "wo": 0.05 * jax.random.normal(keys[4], (D_MODEL, D_MODEL), jnp.float32),
            "bo": jnp.zeros((1, D_MODEL), jnp.float32),
            "w1": 0.05 * jax.random.normal(keys[5], (D_MODEL, D_FF), jnp.float32),
            "b1": jnp.zeros((1, D_FF), jnp.float32),
            "w2": 0.05 * jax.random.normal(keys[6], (D_FF, D_MODEL), jnp.float32),
            "b2": jnp.zeros((1, D_MODEL), jnp.float32),
            "g1": jnp.ones((1, D_MODEL), jnp.float32),
            "be1": jnp.zeros((1, D_MODEL), jnp.float32),
            "g2": jnp.ones((1, D_MODEL), jnp.float32),
            "be2": jnp.zeros((1, D_MODEL), jnp.float32),
        }
        layer_params.append(p)
    kf, key = jax.random.split(key)
    w_final = 0.05 * jax.random.normal(kf, (D_MODEL, 1), jnp.float32)
    b_final = jnp.zeros((1, 1), jnp.float32)
    return layer_params, w_final, b_final


def pack_params(layer_params):
    """Stack per-layer weights along a leading L axis; pack small vectors."""
    assert D_FF <= 3 * D_MODEL and NUM_HEADS * DEPTH == D_MODEL

    def pad96(v):
        return jnp.pad(v, ((0, 0), (0, 3 * D_MODEL - v.shape[1])))

    wqkv, wo, w1, w2, vec = [], [], [], [], []
    for p in layer_params:
        wqkv.append(jnp.concatenate([p["wq"], p["wk"], p["wv"]], axis=1))  # (D, 3D)
        wo.append(p["wo"])
        w1.append(p["w1"])
        w2.append(p["w2"])
        vec.append(jnp.concatenate([
            jnp.concatenate([p["bq"], p["bk"], p["bv"]], axis=1),  # row 0: b_qkv
            pad96(p["b1"]),                                        # row 1
            pad96(p["bo"]),                                        # row 2
            pad96(p["b2"]),                                        # row 3
            pad96(p["g1"]),                                        # row 4
            pad96(p["be1"]),                                       # row 5
            pad96(p["g2"]),                                        # row 6
            pad96(p["be2"]),                                       # row 7
        ], axis=0))                                                # (8, 96)
    return (jnp.stack(wqkv).astype(jnp.bfloat16),
            jnp.stack(wo).astype(jnp.bfloat16),
            jnp.stack(w1).astype(jnp.bfloat16),
            jnp.stack(w2).astype(jnp.bfloat16),
            jnp.stack(vec).astype(jnp.float32))


def pack_final(w_final, b_final):
    """Pad final (D,1) weight to a lane-dense (D, 128) slab (result in lane 0)."""
    wf = jnp.zeros((D_MODEL, OUT_PAD), jnp.float32).at[:, 0].set(w_final[:, 0])
    bf = jnp.zeros((1, OUT_PAD), jnp.float32).at[0, 0].set(b_final[0, 0])
    return wf.astype(jnp.bfloat16), bf


# ------------------------------ pure-JAX reference (f32) -------------------------
def ref_forward(x, pe, layer_params, w_final, b_final):
    x = x + pe[None]
    B, S, D = x.shape
    for p in layer_params:
        q = x @ p["wq"] + p["bq"]
        k = x @ p["wk"] + p["bk"]
        v = x @ p["wv"] + p["bv"]

        def split(t):
            return t.reshape(B, S, NUM_HEADS, DEPTH).transpose(0, 2, 1, 3)

        qh, kh, vh = split(q), split(k), split(v)
        logits = jnp.einsum("bhqd,bhkd->bhqk", qh, kh) / math.sqrt(DEPTH)
        w = jax.nn.softmax(logits, axis=-1)
        attn = jnp.einsum("bhqk,bhkd->bhqd", w, vh)
        attn = attn.transpose(0, 2, 1, 3).reshape(B, S, D)
        attn = attn @ p["wo"] + p["bo"]

        h1 = x + attn
        mu = h1.mean(-1, keepdims=True)
        var = ((h1 - mu) ** 2).mean(-1, keepdims=True)
        h1n = (h1 - mu) / jnp.sqrt(var + LN_EPS) * p["g1"] + p["be1"]

        f = jnp.maximum(h1n @ p["w1"] + p["b1"], 0.0) @ p["w2"] + p["b2"]
        h2 = h1n + f
        mu2 = h2.mean(-1, keepdims=True)
        var2 = ((h2 - mu2) ** 2).mean(-1, keepdims=True)
        x = (h2 - mu2) / jnp.sqrt(var2 + LN_EPS) * p["g2"] + p["be2"]
    return x @ w_final + b_final


# ------------------------------------ main ---------------------------------------
if __name__ == "__main__":
    key = jax.random.PRNGKey(0)
    k_x, k_p = jax.random.split(key)
    x = jax.random.normal(k_x, (BATCH, SEQ, D_MODEL), jnp.float32)
    pe = make_pos_encoding(SEQ, D_MODEL)
    mask = make_block_mask(BATCH, SEQ)
    layer_params, w_final, b_final = init_params(k_p)

    wqkv, wo, w1, w2, vec = pack_params(layer_params)
    wf_pad, bf_pad = pack_final(w_final, b_final)

    out = transformer_forward(x, pe, mask, wqkv, wo, w1, w2, vec, wf_pad, bf_pad)
    out = jax.block_until_ready(out)

    ref = ref_forward(x, pe, layer_params, w_final, b_final)
    assert out.shape == (BATCH, SEQ, 1)
    # bf16 matmul inputs (f32 accumulation) + approx reciprocal in softmax →
    # slightly relaxed tolerance vs the pure-f32 reference.
    assert jnp.allclose(out, ref, atol=2e-2, rtol=2e-2), "mismatch vs JAX reference"

    print("KERNEL_OK")
</pallas_src>

<mosaic_0001>
module attributes {stable_mosaic.version = 11 : i64} {
  func.func @transformer_kernel(%arg0: memref<16x32xf32, #tpu.memory_space<vmem>>, %arg1: memref<8x32xf32, #tpu.memory_space<vmem>>, %arg2: memref<16x16xf32, #tpu.memory_space<vmem>>, %arg3: memref<2x32x96xbf16, #tpu.memory_space<vmem>>, %arg4: memref<2x32x32xbf16, #tpu.memory_space<vmem>>, %arg5: memref<2x32x64xbf16, #tpu.memory_space<vmem>>, %arg6: memref<2x64x32xbf16, #tpu.memory_space<vmem>>, %arg7: memref<2x8x96xf32, #tpu.memory_space<vmem>>, %arg8: memref<32x128xbf16, #tpu.memory_space<vmem>>, %arg9: memref<1x128xf32, #tpu.memory_space<vmem>>, %arg10: memref<16x128xf32, #tpu.memory_space<vmem>>) attributes {dimension_semantics = [], scalar_prefetch = 0 : i64, scratch_operands = 0 : i64, tpu.core_type = #tpu.core_type<tc>} {
    %c0 = arith.constant 0 : index
    %c0_0 = arith.constant 0 : index
    %0 = vector.load %arg1[%c0, %c0_0] : memref<8x32xf32, #tpu.memory_space<vmem>>, vector<8x32xf32>
    %1 = tpu.concatenate %0, %0 in 0 : vector<8x32xf32>, vector<8x32xf32> -> vector<16x32xf32>
    %c0_1 = arith.constant 0 : index
    %c0_2 = arith.constant 0 : index
    %2 = vector.load %arg0[%c0_1, %c0_2] : memref<16x32xf32, #tpu.memory_space<vmem>>, vector<16x32xf32>
    %3 = arith.addf %2, %1 : vector<16x32xf32>
    %c0_3 = arith.constant 0 : index
    %c0_4 = arith.constant 0 : index
    %4 = vector.load %arg2[%c0_3, %c0_4] : memref<16x16xf32, #tpu.memory_space<vmem>>, vector<16x16xf32>
    %c0_5 = arith.constant 0 : index
    %c0_6 = arith.constant 0 : index
    %c0_7 = arith.constant 0 : index
    %5 = vector.load %arg3[%c0_5, %c0_6, %c0_7] : memref<2x32x96xbf16, #tpu.memory_space<vmem>>, vector<1x32x96xbf16>
    %6 = vector.shape_cast %5 : vector<1x32x96xbf16> to vector<32x96xbf16>
    %c0_8 = arith.constant 0 : index
    %c0_9 = arith.constant 0 : index
    %c0_10 = arith.constant 0 : index
    %7 = vector.load %arg4[%c0_8, %c0_9, %c0_10] : memref<2x32x32xbf16, #tpu.memory_space<vmem>>, vector<1x32x32xbf16>
    %8 = vector.shape_cast %7 : vector<1x32x32xbf16> to vector<32x32xbf16>
    %c0_11 = arith.constant 0 : index
    %c0_12 = arith.constant 0 : index
    %c0_13 = arith.constant 0 : index
    %9 = vector.load %arg5[%c0_11, %c0_12, %c0_13] : memref<2x32x64xbf16, #tpu.memory_space<vmem>>, vector<1x32x64xbf16>
    %10 = vector.shape_cast %9 : vector<1x32x64xbf16> to vector<32x64xbf16>
    %c0_14 = arith.constant 0 : index
    %c0_15 = arith.constant 0 : index
    %c0_16 = arith.constant 0 : index
    %11 = vector.load %arg6[%c0_14, %c0_15, %c0_16] : memref<2x64x32xbf16, #tpu.memory_space<vmem>>, vector<1x64x32xbf16>
    %12 = vector.shape_cast %11 : vector<1x64x32xbf16> to vector<64x32xbf16>
    %c0_17 = arith.constant 0 : index
    %c0_18 = arith.constant 0 : index
    %c0_19 = arith.constant 0 : index
    %13 = vector.load %arg7[%c0_17, %c0_18, %c0_19] : memref<2x8x96xf32, #tpu.memory_space<vmem>>, vector<1x8x96xf32>
    %14 = vector.shape_cast %13 : vector<1x8x96xf32> to vector<8x96xf32>
    %15 = vector.extract_strided_slice %14 {offsets = [0, 0], sizes = [1, 96], strides = [1, 1]} : vector<8x96xf32> to vector<1x96xf32>
    %16 = vector.extract_strided_slice %14 {offsets = [1, 0], sizes = [1, 64], strides = [1, 1]} : vector<8x96xf32> to vector<1x64xf32>
    %17 = vector.extract_strided_slice %14 {offsets = [2, 0], sizes = [1, 32], strides = [1, 1]} : vector<8x96xf32> to vector<1x32xf32>
    %18 = vector.extract_strided_slice %14 {offsets = [3, 0], sizes = [1, 32], strides = [1, 1]} : vector<8x96xf32> to vector<1x32xf32>
    %19 = vector.extract_strided_slice %14 {offsets = [4, 0], sizes = [1, 32], strides = [1, 1]} : vector<8x96xf32> to vector<1x32xf32>
    %20 = vector.extract_strided_slice %14 {offsets = [5, 0], sizes = [1, 32], strides = [1, 1]} : vector<8x96xf32> to vector<1x32xf32>
    %21 = vector.extract_strided_slice %14 {offsets = [6, 0], sizes = [1, 32], strides = [1, 1]} : vector<8x96xf32> to vector<1x32xf32>
    %22 = vector.extract_strided_slice %14 {offsets = [7, 0], sizes = [1, 32], strides = [1, 1]} : vector<8x96xf32> to vector<1x32xf32>
    %23 = arith.truncf %3 : vector<16x32xf32> to vector<16x32xbf16>
    %cst = arith.constant dense<0.000000e+00> : vector<16x96xf32>
    %24 = tpu.matmul %23, %6, %cst {dimension_numbers = #tpu.dot_dimension_numbers<[1], [0], [0], [1], [0, 0, 1, 1], [], []>} : vector<16x32xbf16>, vector<32x96xbf16>, vector<16x96xf32> -> vector<16x96xf32>
    %25 = vector.broadcast %15 : vector<1x96xf32> to vector<16x96xf32>
    %26 = arith.addf %24, %25 : vector<16x96xf32>
    %27 = vector.extract_strided_slice %26 {offsets = [0, 0], sizes = [16, 32], strides = [1, 1]} : vector<16x96xf32> to vector<16x32xf32>
    %28 = arith.truncf %27 : vector<16x32xf32> to vector<16x32xbf16>
    %29 = vector.extract_strided_slice %26 {offsets = [0, 32], sizes = [16, 32], strides = [1, 1]} : vector<16x96xf32> to vector<16x32xf32>
    %30 = tpu.transpose %29, [1, 0] : vector<16x32xf32> -> vector<32x16xf32>
    %31 = arith.truncf %30 : vector<32x16xf32> to vector<32x16xbf16>
    %32 = vector.extract_strided_slice %26 {offsets = [0, 64], sizes = [16, 32], strides = [1, 1]} : vector<16x96xf32> to vector<16x32xf32>
    %33 = arith.truncf %32 : vector<16x32xf32> to vector<16x32xbf16>
    %cst_20 = arith.constant 0.000000e+00 : f32
    %34 = vector.broadcast %cst_20 : f32 to vector<16x32xf32>
    %35 = vector.extract_strided_slice %28 {offsets = [0, 0], sizes = [16, 8], strides = [1, 1]} : vector<16x32xbf16> to vector<16x8xbf16>
    %36 = vector.extract_strided_slice %31 {offsets = [0, 0], sizes = [8, 16], strides = [1, 1]} : vector<32x16xbf16> to vector<8x16xbf16>
    %37 = vector.extract_strided_slice %33 {offsets = [0, 0], sizes = [16, 8], strides = [1, 1]} : vector<16x32xbf16> to vector<16x8xbf16>
    %cst_21 = arith.constant dense<0.000000e+00> : vector<16x16xf32>
    %38 = tpu.matmul %35, %36, %cst_21 {dimension_numbers = #tpu.dot_dimension_numbers<[1], [0], [0], [1], [0, 0, 1, 1], [], []>} : vector<16x8xbf16>, vector<8x16xbf16>, vector<16x16xf32> -> vector<16x16xf32>
    %cst_22 = arith.constant 0.353553385 : f32
    %39 = vector.broadcast %cst_22 : f32 to vector<16x16xf32>
    %40 = arith.mulf %38, %39 : vector<16x16xf32>
    %41 = arith.addf %40, %4 : vector<16x16xf32>
    %cst_23 = arith.constant dense<0xFF800000> : vector<16xf32>
    %42 = vector.multi_reduction <maximumf>, %41, %cst_23 [1] : vector<16x16xf32> to vector<16xf32>
    %43 = vector.shape_cast %42 : vector<16xf32> to vector<16x1xf32>
    %44 = vector.broadcast %43 : vector<16x1xf32> to vector<16x16xf32>
    %45 = arith.subf %41, %44 : vector<16x16xf32>
    %46 = math.exp %45 : vector<16x16xf32>
    %cst_24 = arith.constant dense<0.000000e+00> : vector<16xf32>
    %47 = vector.multi_reduction <add>, %46, %cst_24 [1] : vector<16x16xf32> to vector<16xf32>
    %48 = vector.shape_cast %47 : vector<16xf32> to vector<16x1xf32>
    %49 = tpu.reciprocal %48 {approx = true} : vector<16x1xf32> -> vector<16x1xf32>
    %50 = vector.broadcast %49 : vector<16x1xf32> to vector<16x16xf32>
    %51 = arith.mulf %46, %50 : vector<16x16xf32>
    %52 = arith.truncf %51 : vector<16x16xf32> to vector<16x16xbf16>
    %cst_25 = arith.constant dense<0.000000e+00> : vector<16x8xf32>
    %53 = tpu.matmul %52, %37, %cst_25 {dimension_numbers = #tpu.dot_dimension_numbers<[1], [0], [0], [1], [0, 0, 1, 1], [], []>} : vector<16x16xbf16>, vector<16x8xbf16>, vector<16x8xf32> -> vector<16x8xf32>
    %54 = arith.truncf %53 : vector<16x8xf32> to vector<16x8xbf16>
    %55 = vector.extract_strided_slice %8 {offsets = [0, 0], sizes = [8, 32], strides = [1, 1]} : vector<32x32xbf16> to vector<8x32xbf16>
    %cst_26 = arith.constant dense<0.000000e+00> : vector<16x32xf32>
    %56 = tpu.matmul %54, %55, %cst_26 {dimension_numbers = #tpu.dot_dimension_numbers<[1], [0], [0], [1], [0, 0, 1, 1], [], []>} : vector<16x8xbf16>, vector<8x32xbf16>, vector<16x32xf32> -> vector<16x32xf32>
    %57 = arith.addf %34, %56 : vector<16x32xf32>
    %58 = vector.extract_strided_slice %28 {offsets = [0, 8], sizes = [16, 8], strides = [1, 1]} : vector<16x32xbf16> to vector<16x8xbf16>
    %59 = vector.extract_strided_slice %31 {offsets = [8, 0], sizes = [8, 16], strides = [1, 1]} : vector<32x16xbf16> to vector<8x16xbf16>
    %60 = vector.extract_strided_slice %33 {offsets = [0, 8], sizes = [16, 8], strides = [1, 1]} : vector<16x32xbf16> to vector<16x8xbf16>
    %cst_27 = arith.constant dense<0.000000e+00> : vector<16x16xf32>
    %61 = tpu.matmul %58, %59, %cst_27 {dimension_numbers = #tpu.dot_dimension_numbers<[1], [0], [0], [1], [0, 0, 1, 1], [], []>} : vector<16x8xbf16>, vector<8x16xbf16>, vector<16x16xf32> -> vector<16x16xf32>
    %cst_28 = arith.constant 0.353553385 : f32
    %62 = vector.broadcast %cst_28 : f32 to vector<16x16xf32>
    %63 = arith.mulf %61, %62 : vector<16x16xf32>
    %64 = arith.addf %63, %4 : vector<16x16xf32>
    %cst_29 = arith.constant dense<0xFF800000> : vector<16xf32>
    %65 = vector.multi_reduction <maximumf>, %64, %cst_29 [1] : vector<16x16xf32> to vector<16xf32>
    %66 = vector.shape_cast %65 : vector<16xf32> to vector<16x1xf32>
    %67 = vector.broadcast %66 : vector<16x1xf32> to vector<16x16xf32>
    %68 = arith.subf %64, %67 : vector<16x16xf32>
    %69 = math.exp %68 : vector<16x16xf32>
    %cst_30 = arith.constant dense<0.000000e+00> : vector<16xf32>
    %70 = vector.multi_reduction <add>, %69, %cst_30 [1] : vector<16x16xf32> to vector<16xf32>
    %71 = vector.shape_cast %70 : vector<16xf32> to vector<16x1xf32>
    %72 = tpu.reciprocal %71 {approx = true} : vector<16x1xf32> -> vector<16x1xf32>
    %73 = vector.broadcast %72 : vector<16x1xf32> to vector<16x16xf32>
    %74 = arith.mulf %69, %73 : vector<16x16xf32>
    %75 = arith.truncf %74 : vector<16x16xf32> to vector<16x16xbf16>
    %cst_31 = arith.constant dense<0.000000e+00> : vector<16x8xf32>
    %76 = tpu.matmul %75, %60, %cst_31 {dimension_numbers = #tpu.dot_dimension_numbers<[1], [0], [0], [1], [0, 0, 1, 1], [], []>} : vector<16x16xbf16>, vector<16x8xbf16>, vector<16x8xf32> -> vector<16x8xf32>
    %77 = arith.truncf %76 : vector<16x8xf32> to vector<16x8xbf16>
    %78 = vector.extract_strided_slice %8 {offsets = [8, 0], sizes = [8, 32], strides = [1, 1]} : vector<32x32xbf16> to vector<8x32xbf16>
    %cst_32 = arith.constant dense<0.000000e+00> : vector<16x32xf32>
    %79 = tpu.matmul %77, %78, %cst_32 {dimension_numbers = #tpu.dot_dimension_numbers<[1], [0], [0], [1], [0, 0, 1, 1], [], []>} : vector<16x8xbf16>, vector<8x32xbf16>, vector<16x32xf32> -> vector<16x32xf32>
    %80 = arith.addf %57, %79 : vector<16x32xf32>
    %81 = vector.extract_strided_slice %28 {offsets = [0, 16], sizes = [16, 8], strides = [1, 1]} : vector<16x32xbf16> to vector<16x8xbf16>
    %82 = vector.extract_strided_slice %31 {offsets = [16, 0], sizes = [8, 16], strides = [1, 1]} : vector<32x16xbf16> to vector<8x16xbf16>
    %83 = vector.extract_strided_slice %33 {offsets = [0, 16], sizes = [16, 8], strides = [1, 1]} : vector<16x32xbf16> to vector<16x8xbf16>
    %cst_33 = arith.constant dense<0.000000e+00> : vector<16x16xf32>
    %84 = tpu.matmul %81, %82, %cst_33 {dimension_numbers = #tpu.dot_dimension_numbers<[1], [0], [0], [1], [0, 0, 1, 1], [], []>} : vector<16x8xbf16>, vector<8x16xbf16>, vector<16x16xf32> -> vector<16x16xf32>
    %cst_34 = arith.constant 0.353553385 : f32
    %85 = vector.broadcast %cst_34 : f32 to vector<16x16xf32>
    %86 = arith.mulf %84, %85 : vector<16x16xf32>
    %87 = arith.addf %86, %4 : vector<16x16xf32>
    %cst_35 = arith.constant dense<0xFF800000> : vector<16xf32>
    %88 = vector.multi_reduction <maximumf>, %87, %cst_35 [1] : vector<16x16xf32> to vector<16xf32>
    %89 = vector.shape_cast %88 : vector<16xf32> to vector<16x1xf32>
    %90 = vector.broadcast %89 : vector<16x1xf32> to vector<16x16xf32>
    %91 = arith.subf %87, %90 : vector<16x16xf32>
    %92 = math.exp %91 : vector<16x16xf32>
    %cst_36 = arith.constant dense<0.000000e+00> : vector<16xf32>
    %93 = vector.multi_reduction <add>, %92, %cst_36 [1] : vector<16x16xf32> to vector<16xf32>
    %94 = vector.shape_cast %93 : vector<16xf32> to vector<16x1xf32>
    %95 = tpu.reciprocal %94 {approx = true} : vector<16x1xf32> -> vector<16x1xf32>
    %96 = vector.broadcast %95 : vector<16x1xf32> to vector<16x16xf32>
    %97 = arith.mulf %92, %96 : vector<16x16xf32>
    %98 = arith.truncf %97 : vector<16x16xf32> to vector<16x16xbf16>
    %cst_37 = arith.constant dense<0.000000e+00> : vector<16x8xf32>
    %99 = tpu.matmul %98, %83, %cst_37 {dimension_numbers = #tpu.dot_dimension_numbers<[1], [0], [0], [1], [0, 0, 1, 1], [], []>} : vector<16x16xbf16>, vector<16x8xbf16>, vector<16x8xf32> -> vector<16x8xf32>
    %100 = arith.truncf %99 : vector<16x8xf32> to vector<16x8xbf16>
    %101 = vector.extract_strided_slice %8 {offsets = [16, 0], sizes = [8, 32], strides = [1, 1]} : vector<32x32xbf16> to vector<8x32xbf16>
    %cst_38 = arith.constant dense<0.000000e+00> : vector<16x32xf32>
    %102 = tpu.matmul %100, %101, %cst_38 {dimension_numbers = #tpu.dot_dimension_numbers<[1], [0], [0], [1], [0, 0, 1, 1], [], []>} : vector<16x8xbf16>, vector<8x32xbf16>, vector<16x32xf32> -> vector<16x32xf32>
    %103 = arith.addf %80, %102 : vector<16x32xf32>
    %104 = vector.extract_strided_slice %28 {offsets = [0, 24], sizes = [16, 8], strides = [1, 1]} : vector<16x32xbf16> to vector<16x8xbf16>
    %105 = vector.extract_strided_slice %31 {offsets = [24, 0], sizes = [8, 16], strides = [1, 1]} : vector<32x16xbf16> to vector<8x16xbf16>
    %106 = vector.extract_strided_slice %33 {offsets = [0, 24], sizes = [16, 8], strides = [1, 1]} : vector<16x32xbf16> to vector<16x8xbf16>
    %cst_39 = arith.constant dense<0.000000e+00> : vector<16x16xf32>
    %107 = tpu.matmul %104, %105, %cst_39 {dimension_numbers = #tpu.dot_dimension_numbers<[1], [0], [0], [1], [0, 0, 1, 1], [], []>} : vector<16x8xbf16>, vector<8x16xbf16>, vector<16x16xf32> -> vector<16x16xf32>
    %cst_40 = arith.constant 0.353553385 : f32
    %108 = vector.broadcast %cst_40 : f32 to vector<16x16xf32>
    %109 = arith.mulf %107, %108 : vector<16x16xf32>
    %110 = arith.addf %109, %4 : vector<16x16xf32>
    %cst_41 = arith.constant dense<0xFF800000> : vector<16xf32>
    %111 = vector.multi_reduction <maximumf>, %110, %cst_41 [1] : vector<16x16xf32> to vector<16xf32>
    %112 = vector.shape_cast %111 : vector<16xf32> to vector<16x1xf32>
    %113 = vector.broadcast %112 : vector<16x1xf32> to vector<16x16xf32>
    %114 = arith.subf %110, %113 : vector<16x16xf32>
    %115 = math.exp %114 : vector<16x16xf32>
    %cst_42 = arith.constant dense<0.000000e+00> : vector<16xf32>
    %116 = vector.multi_reduction <add>, %115, %cst_42 [1] : vector<16x16xf32> to vector<16xf32>
    %117 = vector.shape_cast %116 : vector<16xf32> to vector<16x1xf32>
    %118 = tpu.reciprocal %117 {approx = true} : vector<16x1xf32> -> vector<16x1xf32>
    %119 = vector.broadcast %118 : vector<16x1xf32> to vector<16x16xf32>
    %120 = arith.mulf %115, %119 : vector<16x16xf32>
    %121 = arith.truncf %120 : vector<16x16xf32> to vector<16x16xbf16>
    %cst_43 = arith.constant dense<0.000000e+00> : vector<16x8xf32>
    %122 = tpu.matmul %121, %106, %cst_43 {dimension_numbers = #tpu.dot_dimension_numbers<[1], [0], [0], [1], [0, 0, 1, 1], [], []>} : vector<16x16xbf16>, vector<16x8xbf16>, vector<16x8xf32> -> vector<16x8xf32>
    %123 = arith.truncf %122 : vector<16x8xf32> to vector<16x8xbf16>
    %124 = vector.extract_strided_slice %8 {offsets = [24, 0], sizes = [8, 32], strides = [1, 1]} : vector<32x32xbf16> to vector<8x32xbf16>
    %cst_44 = arith.constant dense<0.000000e+00> : vector<16x32xf32>
    %125 = tpu.matmul %123, %124, %cst_44 {dimension_numbers = #tpu.dot_dimension_numbers<[1], [0], [0], [1], [0, 0, 1, 1], [], []>} : vector<16x8xbf16>, vector<8x32xbf16>, vector<16x32xf32> -> vector<16x32xf32>
    %126 = arith.addf %103, %125 : vector<16x32xf32>
    %127 = vector.broadcast %17 : vector<1x32xf32> to vector<16x32xf32>
    %128 = arith.addf %126, %127 : vector<16x32xf32>
    %129 = arith.addf %3, %128 : vector<16x32xf32>
    %cst_45 = arith.constant dense<0.000000e+00> : vector<16xf32>
    %130 = vector.multi_reduction <add>, %129, %cst_45 [1] : vector<16x32xf32> to vector<16xf32>
    %131 = vector.shape_cast %130 : vector<16xf32> to vector<16x1xf32>
    %cst_46 = arith.constant 3.200000e+01 : f32
    %132 = vector.broadcast %cst_46 : f32 to vector<16x1xf32>
    %133 = arith.divf %131, %132 : vector<16x1xf32>
    %134 = vector.broadcast %133 : vector<16x1xf32> to vector<16x32xf32>
    %135 = arith.subf %129, %134 : vector<16x32xf32>
    %136 = arith.mulf %135, %135 : vector<16x32xf32>
    %cst_47 = arith.constant dense<0.000000e+00> : vector<16xf32>
    %137 = vector.multi_reduction <add>, %136, %cst_47 [1] : vector<16x32xf32> to vector<16xf32>
    %138 = vector.shape_cast %137 : vector<16xf32> to vector<16x1xf32>
    %cst_48 = arith.constant 3.200000e+01 : f32
    %139 = vector.broadcast %cst_48 : f32 to vector<16x1xf32>
    %140 = arith.divf %138, %139 : vector<16x1xf32>
    %141 = vector.broadcast %133 : vector<16x1xf32> to vector<16x32xf32>
    %142 = arith.subf %129, %141 : vector<16x32xf32>
    %cst_49 = arith.constant 9.99999974E-6 : f32
    %143 = vector.broadcast %cst_49 : f32 to vector<16x1xf32>
    %144 = arith.addf %140, %143 : vector<16x1xf32>
    %145 = math.rsqrt %144 : vector<16x1xf32>
    %146 = vector.broadcast %145 : vector<16x1xf32> to vector<16x32xf32>
    %147 = arith.mulf %142, %146 : vector<16x32xf32>
    %148 = vector.broadcast %19 : vector<1x32xf32> to vector<16x32xf32>
    %149 = arith.mulf %147, %148 : vector<16x32xf32>
    %150 = vector.broadcast %20 : vector<1x32xf32> to vector<16x32xf32>
    %151 = arith.addf %149, %150 : vector<16x32xf32>
    %152 = arith.truncf %151 : vector<16x32xf32> to vector<16x32xbf16>
    %cst_50 = arith.constant dense<0.000000e+00> : vector<16x64xf32>
    %153 = tpu.matmul %152, %10, %cst_50 {dimension_numbers = #tpu.dot_dimension_numbers<[1], [0], [0], [1], [0, 0, 1, 1], [], []>} : vector<16x32xbf16>, vector<32x64xbf16>, vector<16x64xf32> -> vector<16x64xf32>
    %154 = vector.broadcast %16 : vector<1x64xf32> to vector<16x64xf32>
    %155 = arith.addf %153, %154 : vector<16x64xf32>
    %cst_51 = arith.constant 0.000000e+00 : f32
    %156 = vector.broadcast %cst_51 : f32 to vector<16x64xf32>
    %157 = arith.maximumf %155, %156 : vector<16x64xf32>
    %158 = arith.truncf %157 : vector<16x64xf32> to vector<16x64xbf16>
    %cst_52 = arith.constant dense<0.000000e+00> : vector<16x32xf32>
    %159 = tpu.matmul %158, %12, %cst_52 {dimension_numbers = #tpu.dot_dimension_numbers<[1], [0], [0], [1], [0, 0, 1, 1], [], []>} : vector<16x64xbf16>, vector<64x32xbf16>, vector<16x32xf32> -> vector<16x32xf32>
    %160 = vector.broadcast %18 : vector<1x32xf32> to vector<16x32xf32>
    %161 = arith.addf %159, %160 : vector<16x32xf32>
    %162 = arith.addf %151, %161 : vector<16x32xf32>
    %cst_53 = arith.constant dense<0.000000e+00> : vector<16xf32>
    %163 = vector.multi_reduction <add>, %162, %cst_53 [1] : vector<16x32xf32> to vector<16xf32>
    %164 = vector.shape_cast %163 : vector<16xf32> to vector<16x1xf32>
    %cst_54 = arith.constant 3.200000e+01 : f32
    %165 = vector.broadcast %cst_54 : f32 to vector<16x1xf32>
    %166 = arith.divf %164, %165 : vector<16x1xf32>
    %167 = vector.broadcast %166 : vector<16x1xf32> to vector<16x32xf32>
    %168 = arith.subf %162, %167 : vector<16x32xf32>
    %169 = arith.mulf %168, %168 : vector<16x32xf32>
    %cst_55 = arith.constant dense<0.000000e+00> : vector<16xf32>
    %170 = vector.multi_reduction <add>, %169, %cst_55 [1] : vector<16x32xf32> to vector<16xf32>
    %171 = vector.shape_cast %170 : vector<16xf32> to vector<16x1xf32>
    %cst_56 = arith.constant 3.200000e+01 : f32
    %172 = vector.broadcast %cst_56 : f32 to vector<16x1xf32>
    %173 = arith.divf %171, %172 : vector<16x1xf32>
    %174 = vector.broadcast %166 : vector<16x1xf32> to vector<16x32xf32>
    %175 = arith.subf %162, %174 : vector<16x32xf32>
    %cst_57 = arith.constant 9.99999974E-6 : f32
    %176 = vector.broadcast %cst_57 : f32 to vector<16x1xf32>
    %177 = arith.addf %173, %176 : vector<16x1xf32>
    %178 = math.rsqrt %177 : vector<16x1xf32>
    %179 = vector.broadcast %178 : vector<16x1xf32> to vector<16x32xf32>
    %180 = arith.mulf %175, %179 : vector<16x32xf32>
    %181 = vector.broadcast %21 : vector<1x32xf32> to vector<16x32xf32>
    %182 = arith.mulf %180, %181 : vector<16x32xf32>
    %183 = vector.broadcast %22 : vector<1x32xf32> to vector<16x32xf32>
    %184 = arith.addf %182, %183 : vector<16x32xf32>
    %c1 = arith.constant 1 : index
    %c0_58 = arith.constant 0 : index
    %c0_59 = arith.constant 0 : index
    %185 = vector.load %arg3[%c1, %c0_58, %c0_59] : memref<2x32x96xbf16, #tpu.memory_space<vmem>>, vector<1x32x96xbf16>
    %186 = vector.shape_cast %185 : vector<1x32x96xbf16> to vector<32x96xbf16>
    %c1_60 = arith.constant 1 : index
    %c0_61 = arith.constant 0 : index
    %c0_62 = arith.constant 0 : index
    %187 = vector.load %arg4[%c1_60, %c0_61, %c0_62] : memref<2x32x32xbf16, #tpu.memory_space<vmem>>, vector<1x32x32xbf16>
    %188 = vector.shape_cast %187 : vector<1x32x32xbf16> to vector<32x32xbf16>
    %c1_63 = arith.constant 1 : index
    %c0_64 = arith.constant 0 : index
    %c0_65 = arith.constant 0 : index
    %189 = vector.load %arg5[%c1_63, %c0_64, %c0_65] : memref<2x32x64xbf16, #tpu.memory_space<vmem>>, vector<1x32x64xbf16>
    %190 = vector.shape_cast %189 : vector<1x32x64xbf16> to vector<32x64xbf16>
    %c1_66 = arith.constant 1 : index
    %c0_67 = arith.constant 0 : index
    %c0_68 = arith.constant 0 : index
    %191 = vector.load %arg6[%c1_66, %c0_67, %c0_68] : memref<2x64x32xbf16, #tpu.memory_space<vmem>>, vector<1x64x32xbf16>
    %192 = vector.shape_cast %191 : vector<1x64x32xbf16> to vector<64x32xbf16>
    %c1_69 = arith.constant 1 : index
    %c0_70 = arith.constant 0 : index
    %c0_71 = arith.constant 0 : index
    %193 = vector.load %arg7[%c1_69, %c0_70, %c0_71] : memref<2x8x96xf32, #tpu.memory_space<vmem>>, vector<1x8x96xf32>
    %194 = vector.shape_cast %193 : vector<1x8x96xf32> to vector<8x96xf32>
    %195 = vector.extract_strided_slice %194 {offsets = [0, 0], sizes = [1, 96], strides = [1, 1]} : vector<8x96xf32> to vector<1x96xf32>
    %196 = vector.extract_strided_slice %194 {offsets = [1, 0], sizes = [1, 64], strides = [1, 1]} : vector<8x96xf32> to vector<1x64xf32>
    %197 = vector.extract_strided_slice %194 {offsets = [2, 0], sizes = [1, 32], strides = [1, 1]} : vector<8x96xf32> to vector<1x32xf32>
    %198 = vector.extract_strided_slice %194 {offsets = [3, 0], sizes = [1, 32], strides = [1, 1]} : vector<8x96xf32> to vector<1x32xf32>
    %199 = vector.extract_strided_slice %194 {offsets = [4, 0], sizes = [1, 32], strides = [1, 1]} : vector<8x96xf32> to vector<1x32xf32>
    %200 = vector.extract_strided_slice %194 {offsets = [5, 0], sizes = [1, 32], strides = [1, 1]} : vector<8x96xf32> to vector<1x32xf32>
    %201 = vector.extract_strided_slice %194 {offsets = [6, 0], sizes = [1, 32], strides = [1, 1]} : vector<8x96xf32> to vector<1x32xf32>
    %202 = vector.extract_strided_slice %194 {offsets = [7, 0], sizes = [1, 32], strides = [1, 1]} : vector<8x96xf32> to vector<1x32xf32>
    %203 = arith.truncf %184 : vector<16x32xf32> to vector<16x32xbf16>
    %cst_72 = arith.constant dense<0.000000e+00> : vector<16x96xf32>
    %204 = tpu.matmul %203, %186, %cst_72 {dimension_numbers = #tpu.dot_dimension_numbers<[1], [0], [0], [1], [0, 0, 1, 1], [], []>} : vector<16x32xbf16>, vector<32x96xbf16>, vector<16x96xf32> -> vector<16x96xf32>
    %205 = vector.broadcast %195 : vector<1x96xf32> to vector<16x96xf32>
    %206 = arith.addf %204, %205 : vector<16x96xf32>
    %207 = vector.extract_strided_slice %206 {offsets = [0, 0], sizes = [16, 32], strides = [1, 1]} : vector<16x96xf32> to vector<16x32xf32>
    %208 = arith.truncf %207 : vector<16x32xf32> to vector<16x32xbf16>
    %209 = vector.extract_strided_slice %206 {offsets = [0, 32], sizes = [16, 32], strides = [1, 1]} : vector<16x96xf32> to vector<16x32xf32>
    %210 = tpu.transpose %209, [1, 0] : vector<16x32xf32> -> vector<32x16xf32>
    %211 = arith.truncf %210 : vector<32x16xf32> to vector<32x16xbf16>
    %212 = vector.extract_strided_slice %206 {offsets = [0, 64], sizes = [16, 32], strides = [1, 1]} : vector<16x96xf32> to vector<16x32xf32>
    %213 = arith.truncf %212 : vector<16x32xf32> to vector<16x32xbf16>
    %cst_73 = arith.constant 0.000000e+00 : f32
    %214 = vector.broadcast %cst_73 : f32 to vector<16x32xf32>
    %215 = vector.extract_strided_slice %208 {offsets = [0, 0], sizes = [16, 8], strides = [1, 1]} : vector<16x32xbf16> to vector<16x8xbf16>
    %216 = vector.extract_strided_slice %211 {offsets = [0, 0], sizes = [8, 16], strides = [1, 1]} : vector<32x16xbf16> to vector<8x16xbf16>
    %217 = vector.extract_strided_slice %213 {offsets = [0, 0], sizes = [16, 8], strides = [1, 1]} : vector<16x32xbf16> to vector<16x8xbf16>
    %cst_74 = arith.constant dense<0.000000e+00> : vector<16x16xf32>
    %218 = tpu.matmul %215, %216, %cst_74 {dimension_numbers = #tpu.dot_dimension_numbers<[1], [0], [0], [1], [0, 0, 1, 1], [], []>} : vector<16x8xbf16>, vector<8x16xbf16>, vector<16x16xf32> -> vector<16x16xf32>
    %cst_75 = arith.constant 0.353553385 : f32
    %219 = vector.broadcast %cst_75 : f32 to vector<16x16xf32>
    %220 = arith.mulf %218, %219 : vector<16x16xf32>
    %221 = arith.addf %220, %4 : vector<16x16xf32>
    %cst_76 = arith.constant dense<0xFF800000> : vector<16xf32>
    %222 = vector.multi_reduction <maximumf>, %221, %cst_76 [1] : vector<16x16xf32> to vector<16xf32>
    %223 = vector.shape_cast %222 : vector<16xf32> to vector<16x1xf32>
    %224 = vector.broadcast %223 : vector<16x1xf32> to vector<16x16xf32>
    %225 = arith.subf %221, %224 : vector<16x16xf32>
    %226 = math.exp %225 : vector<16x16xf32>
    %cst_77 = arith.constant dense<0.000000e+00> : vector<16xf32>
    %227 = vector.multi_reduction <add>, %226, %cst_77 [1] : vector<16x16xf32> to vector<16xf32>
    %228 = vector.shape_cast %227 : vector<16xf32> to vector<16x1xf32>
    %229 = tpu.reciprocal %228 {approx = true} : vector<16x1xf32> -> vector<16x1xf32>
    %230 = vector.broadcast %229 : vector<16x1xf32> to vector<16x16xf32>
    %231 = arith.mulf %226, %230 : vector<16x16xf32>
    %232 = arith.truncf %231 : vector<16x16xf32> to vector<16x16xbf16>
    %cst_78 = arith.constant dense<0.000000e+00> : vector<16x8xf32>
    %233 = tpu.matmul %232, %217, %cst_78 {dimension_numbers = #tpu.dot_dimension_numbers<[1], [0], [0], [1], [0, 0, 1, 1], [], []>} : vector<16x16xbf16>, vector<16x8xbf16>, vector<16x8xf32> -> vector<16x8xf32>
    %234 = arith.truncf %233 : vector<16x8xf32> to vector<16x8xbf16>
    %235 = vector.extract_strided_slice %188 {offsets = [0, 0], sizes = [8, 32], strides = [1, 1]} : vector<32x32xbf16> to vector<8x32xbf16>
    %cst_79 = arith.constant dense<0.000000e+00> : vector<16x32xf32>
    %236 = tpu.matmul %234, %235, %cst_79 {dimension_numbers = #tpu.dot_dimension_numbers<[1], [0], [0], [1], [0, 0, 1, 1], [], []>} : vector<16x8xbf16>, vector<8x32xbf16>, vector<16x32xf32> -> vector<16x32xf32>
    %237 = arith.addf %214, %236 : vector<16x32xf32>
    %238 = vector.extract_strided_slice %208 {offsets = [0, 8], sizes = [16, 8], strides = [1, 1]} : vector<16x32xbf16> to vector<16x8xbf16>
    %239 = vector.extract_strided_slice %211 {offsets = [8, 0], sizes = [8, 16], strides = [1, 1]} : vector<32x16xbf16> to vector<8x16xbf16>
    %240 = vector.extract_strided_slice %213 {offsets = [0, 8], sizes = [16, 8], strides = [1, 1]} : vector<16x32xbf16> to vector<16x8xbf16>
    %cst_80 = arith.constant dense<0.000000e+00> : vector<16x16xf32>
    %241 = tpu.matmul %238, %239, %cst_80 {dimension_numbers = #tpu.dot_dimension_numbers<[1], [0], [0], [1], [0, 0, 1, 1], [], []>} : vector<16x8xbf16>, vector<8x16xbf16>, vector<16x16xf32> -> vector<16x16xf32>
    %cst_81 = arith.constant 0.353553385 : f32
    %242 = vector.broadcast %cst_81 : f32 to vector<16x16xf32>
    %243 = arith.mulf %241, %242 : vector<16x16xf32>
    %244 = arith.addf %243, %4 : vector<16x16xf32>
    %cst_82 = arith.constant dense<0xFF800000> : vector<16xf32>
    %245 = vector.multi_reduction <maximumf>, %244, %cst_82 [1] : vector<16x16xf32> to vector<16xf32>
    %246 = vector.shape_cast %245 : vector<16xf32> to vector<16x1xf32>
    %247 = vector.broadcast %246 : vector<16x1xf32> to vector<16x16xf32>
    %248 = arith.subf %244, %247 : vector<16x16xf32>
    %249 = math.exp %248 : vector<16x16xf32>
    %cst_83 = arith.constant dense<0.000000e+00> : vector<16xf32>
    %250 = vector.multi_reduction <add>, %249, %cst_83 [1] : vector<16x16xf32> to vector<16xf32>
    %251 = vector.shape_cast %250 : vector<16xf32> to vector<16x1xf32>
    %252 = tpu.reciprocal %251 {approx = true} : vector<16x1xf32> -> vector<16x1xf32>
    %253 = vector.broadcast %252 : vector<16x1xf32> to vector<16x16xf32>
    %254 = arith.mulf %249, %253 : vector<16x16xf32>
    %255 = arith.truncf %254 : vector<16x16xf32> to vector<16x16xbf16>
    %cst_84 = arith.constant dense<0.000000e+00> : vector<16x8xf32>
    %256 = tpu.matmul %255, %240, %cst_84 {dimension_numbers = #tpu.dot_dimension_numbers<[1], [0], [0], [1], [0, 0, 1, 1], [], []>} : vector<16x16xbf16>, vector<16x8xbf16>, vector<16x8xf32> -> vector<16x8xf32>
    %257 = arith.truncf %256 : vector<16x8xf32> to vector<16x8xbf16>
    %258 = vector.extract_strided_slice %188 {offsets = [8, 0], sizes = [8, 32], strides = [1, 1]} : vector<32x32xbf16> to vector<8x32xbf16>
    %cst_85 = arith.constant dense<0.000000e+00> : vector<16x32xf32>
    %259 = tpu.matmul %257, %258, %cst_85 {dimension_numbers = #tpu.dot_dimension_numbers<[1], [0], [0], [1], [0, 0, 1, 1], [], []>} : vector<16x8xbf16>, vector<8x32xbf16>, vector<16x32xf32> -> vector<16x32xf32>
    %260 = arith.addf %237, %259 : vector<16x32xf32>
    %261 = vector.extract_strided_slice %208 {offsets = [0, 16], sizes = [16, 8], strides = [1, 1]} : vector<16x32xbf16> to vector<16x8xbf16>
    %262 = vector.extract_strided_slice %211 {offsets = [16, 0], sizes = [8, 16], strides = [1, 1]} : vector<32x16xbf16> to vector<8x16xbf16>
    %263 = vector.extract_strided_slice %213 {offsets = [0, 16], sizes = [16, 8], strides = [1, 1]} : vector<16x32xbf16> to vector<16x8xbf16>
    %cst_86 = arith.constant dense<0.000000e+00> : vector<16x16xf32>
    %264 = tpu.matmul %261, %262, %cst_86 {dimension_numbers = #tpu.dot_dimension_numbers<[1], [0], [0], [1], [0, 0, 1, 1], [], []>} : vector<16x8xbf16>, vector<8x16xbf16>, vector<16x16xf32> -> vector<16x16xf32>
    %cst_87 = arith.constant 0.353553385 : f32
    %265 = vector.broadcast %cst_87 : f32 to vector<16x16xf32>
    %266 = arith.mulf %264, %265 : vector<16x16xf32>
    %267 = arith.addf %266, %4 : vector<16x16xf32>
    %cst_88 = arith.constant dense<0xFF800000> : vector<16xf32>
    %268 = vector.multi_reduction <maximumf>, %267, %cst_88 [1] : vector<16x16xf32> to vector<16xf32>
    %269 = vector.shape_cast %268 : vector<16xf32> to vector<16x1xf32>
    %270 = vector.broadcast %269 : vector<16x1xf32> to vector<16x16xf32>
    %271 = arith.subf %267, %270 : vector<16x16xf32>
    %272 = math.exp %271 : vector<16x16xf32>
    %cst_89 = arith.constant dense<0.000000e+00> : vector<16xf32>
    %273 = vector.multi_reduction <add>, %272, %cst_89 [1] : vector<16x16xf32> to vector<16xf32>
    %274 = vector.shape_cast %273 : vector<16xf32> to vector<16x1xf32>
    %275 = tpu.reciprocal %274 {approx = true} : vector<16x1xf32> -> vector<16x1xf32>
    %276 = vector.broadcast %275 : vector<16x1xf32> to vector<16x16xf32>
    %277 = arith.mulf %272, %276 : vector<16x16xf32>
    %278 = arith.truncf %277 : vector<16x16xf32> to vector<16x16xbf16>
    %cst_90 = arith.constant dense<0.000000e+00> : vector<16x8xf32>
    %279 = tpu.matmul %278, %263, %cst_90 {dimension_numbers = #tpu.dot_dimension_numbers<[1], [0], [0], [1], [0, 0, 1, 1], [], []>} : vector<16x16xbf16>, vector<16x8xbf16>, vector<16x8xf32> -> vector<16x8xf32>
    %280 = arith.truncf %279 : vector<16x8xf32> to vector<16x8xbf16>
    %281 = vector.extract_strided_slice %188 {offsets = [16, 0], sizes = [8, 32], strides = [1, 1]} : vector<32x32xbf16> to vector<8x32xbf16>
    %cst_91 = arith.constant dense<0.000000e+00> : vector<16x32xf32>
    %282 = tpu.matmul %280, %281, %cst_91 {dimension_numbers = #tpu.dot_dimension_numbers<[1], [0], [0], [1], [0, 0, 1, 1], [], []>} : vector<16x8xbf16>, vector<8x32xbf16>, vector<16x32xf32> -> vector<16x32xf32>
    %283 = arith.addf %260, %282 : vector<16x32xf32>
    %284 = vector.extract_strided_slice %208 {offsets = [0, 24], sizes = [16, 8], strides = [1, 1]} : vector<16x32xbf16> to vector<16x8xbf16>
    %285 = vector.extract_strided_slice %211 {offsets = [24, 0], sizes = [8, 16], strides = [1, 1]} : vector<32x16xbf16> to vector<8x16xbf16>
    %286 = vector.extract_strided_slice %213 {offsets = [0, 24], sizes = [16, 8], strides = [1, 1]} : vector<16x32xbf16> to vector<16x8xbf16>
    %cst_92 = arith.constant dense<0.000000e+00> : vector<16x16xf32>
    %287 = tpu.matmul %284, %285, %cst_92 {dimension_numbers = #tpu.dot_dimension_numbers<[1], [0], [0], [1], [0, 0, 1, 1], [], []>} : vector<16x8xbf16>, vector<8x16xbf16>, vector<16x16xf32> -> vector<16x16xf32>
    %cst_93 = arith.constant 0.353553385 : f32
    %288 = vector.broadcast %cst_93 : f32 to vector<16x16xf32>
    %289 = arith.mulf %287, %288 : vector<16x16xf32>
    %290 = arith.addf %289, %4 : vector<16x16xf32>
    %cst_94 = arith.constant dense<0xFF800000> : vector<16xf32>
    %291 = vector.multi_reduction <maximumf>, %290, %cst_94 [1] : vector<16x16xf32> to vector<16xf32>
    %292 = vector.shape_cast %291 : vector<16xf32> to vector<16x1xf32>
    %293 = vector.broadcast %292 : vector<16x1xf32> to vector<16x16xf32>
    %294 = arith.subf %290, %293 : vector<16x16xf32>
    %295 = math.exp %294 : vector<16x16xf32>
    %cst_95 = arith.constant dense<0.000000e+00> : vector<16xf32>
    %296 = vector.multi_reduction <add>, %295, %cst_95 [1] : vector<16x16xf32> to vector<16xf32>
    %297 = vector.shape_cast %296 : vector<16xf32> to vector<16x1xf32>
    %298 = tpu.reciprocal %297 {approx = true} : vector<16x1xf32> -> vector<16x1xf32>
    %299 = vector.broadcast %298 : vector<16x1xf32> to vector<16x16xf32>
    %300 = arith.mulf %295, %299 : vector<16x16xf32>
    %301 = arith.truncf %300 : vector<16x16xf32> to vector<16x16xbf16>
    %cst_96 = arith.constant dense<0.000000e+00> : vector<16x8xf32>
    %302 = tpu.matmul %301, %286, %cst_96 {dimension_numbers = #tpu.dot_dimension_numbers<[1], [0], [0], [1], [0, 0, 1, 1], [], []>} : vector<16x16xbf16>, vector<16x8xbf16>, vector<16x8xf32> -> vector<16x8xf32>
    %303 = arith.truncf %302 : vector<16x8xf32> to vector<16x8xbf16>
    %304 = vector.extract_strided_slice %188 {offsets = [24, 0], sizes = [8, 32], strides = [1, 1]} : vector<32x32xbf16> to vector<8x32xbf16>
    %cst_97 = arith.constant dense<0.000000e+00> : vector<16x32xf32>
    %305 = tpu.matmul %303, %304, %cst_97 {dimension_numbers = #tpu.dot_dimension_numbers<[1], [0], [0], [1], [0, 0, 1, 1], [], []>} : vector<16x8xbf16>, vector<8x32xbf16>, vector<16x32xf32> -> vector<16x32xf32>
    %306 = arith.addf %283, %305 : vector<16x32xf32>
    %307 = vector.broadcast %197 : vector<1x32xf32> to vector<16x32xf32>
    %308 = arith.addf %306, %307 : vector<16x32xf32>
    %309 = arith.addf %184, %308 : vector<16x32xf32>
    %cst_98 = arith.constant dense<0.000000e+00> : vector<16xf32>
    %310 = vector.multi_reduction <add>, %309, %cst_98 [1] : vector<16x32xf32> to vector<16xf32>
    %311 = vector.shape_cast %310 : vector<16xf32> to vector<16x1xf32>
    %cst_99 = arith.constant 3.200000e+01 : f32
    %312 = vector.broadcast %cst_99 : f32 to vector<16x1xf32>
    %313 = arith.divf %311, %312 : vector<16x1xf32>
    %314 = vector.broadcast %313 : vector<16x1xf32> to vector<16x32xf32>
    %315 = arith.subf %309, %314 : vector<16x32xf32>
    %316 = arith.mulf %315, %315 : vector<16x32xf32>
    %cst_100 = arith.constant dense<0.000000e+00> : vector<16xf32>
    %317 = vector.multi_reduction <add>, %316, %cst_100 [1] : vector<16x32xf32> to vector<16xf32>
    %318 = vector.shape_cast %317 : vector<16xf32> to vector<16x1xf32>
    %cst_101 = arith.constant 3.200000e+01 : f32
    %319 = vector.broadcast %cst_101 : f32 to vector<16x1xf32>
    %320 = arith.divf %318, %319 : vector<16x1xf32>
    %321 = vector.broadcast %313 : vector<16x1xf32> to vector<16x32xf32>
    %322 = arith.subf %309, %321 : vector<16x32xf32>
    %cst_102 = arith.constant 9.99999974E-6 : f32
    %323 = vector.broadcast %cst_102 : f32 to vector<16x1xf32>
    %324 = arith.addf %320, %323 : vector<16x1xf32>
    %325 = math.rsqrt %324 : vector<16x1xf32>
    %326 = vector.broadcast %325 : vector<16x1xf32> to vector<16x32xf32>
    %327 = arith.mulf %322, %326 : vector<16x32xf32>
    %328 = vector.broadcast %199 : vector<1x32xf32> to vector<16x32xf32>
    %329 = arith.mulf %327, %328 : vector<16x32xf32>
    %330 = vector.broadcast %200 : vector<1x32xf32> to vector<16x32xf32>
    %331 = arith.addf %329, %330 : vector<16x32xf32>
    %332 = arith.truncf %331 : vector<16x32xf32> to vector<16x32xbf16>
    %cst_103 = arith.constant dense<0.000000e+00> : vector<16x64xf32>
    %333 = tpu.matmul %332, %190, %cst_103 {dimension_numbers = #tpu.dot_dimension_numbers<[1], [0], [0], [1], [0, 0, 1, 1], [], []>} : vector<16x32xbf16>, vector<32x64xbf16>, vector<16x64xf32> -> vector<16x64xf32>
    %334 = vector.broadcast %196 : vector<1x64xf32> to vector<16x64xf32>
    %335 = arith.addf %333, %334 : vector<16x64xf32>
    %cst_104 = arith.constant 0.000000e+00 : f32
    %336 = vector.broadcast %cst_104 : f32 to vector<16x64xf32>
    %337 = arith.maximumf %335, %336 : vector<16x64xf32>
    %338 = arith.truncf %337 : vector<16x64xf32> to vector<16x64xbf16>
    %cst_105 = arith.constant dense<0.000000e+00> : vector<16x32xf32>
    %339 = tpu.matmul %338, %192, %cst_105 {dimension_numbers = #tpu.dot_dimension_numbers<[1], [0], [0], [1], [0, 0, 1, 1], [], []>} : vector<16x64xbf16>, vector<64x32xbf16>, vector<16x32xf32> -> vector<16x32xf32>
    %340 = vector.broadcast %198 : vector<1x32xf32> to vector<16x32xf32>
    %341 = arith.addf %339, %340 : vector<16x32xf32>
    %342 = arith.addf %331, %341 : vector<16x32xf32>
    %cst_106 = arith.constant dense<0.000000e+00> : vector<16xf32>
    %343 = vector.multi_reduction <add>, %342, %cst_106 [1] : vector<16x32xf32> to vector<16xf32>
    %344 = vector.shape_cast %343 : vector<16xf32> to vector<16x1xf32>
    %cst_107 = arith.constant 3.200000e+01 : f32
    %345 = vector.broadcast %cst_107 : f32 to vector<16x1xf32>
    %346 = arith.divf %344, %345 : vector<16x1xf32>
    %347 = vector.broadcast %346 : vector<16x1xf32> to vector<16x32xf32>
    %348 = arith.subf %342, %347 : vector<16x32xf32>
    %349 = arith.mulf %348, %348 : vector<16x32xf32>
    %cst_108 = arith.constant dense<0.000000e+00> : vector<16xf32>
    %350 = vector.multi_reduction <add>, %349, %cst_108 [1] : vector<16x32xf32> to vector<16xf32>
    %351 = vector.shape_cast %350 : vector<16xf32> to vector<16x1xf32>
    %cst_109 = arith.constant 3.200000e+01 : f32
    %352 = vector.broadcast %cst_109 : f32 to vector<16x1xf32>
    %353 = arith.divf %351, %352 : vector<16x1xf32>
    %354 = vector.broadcast %346 : vector<16x1xf32> to vector<16x32xf32>
    %355 = arith.subf %342, %354 : vector<16x32xf32>
    %cst_110 = arith.constant 9.99999974E-6 : f32
    %356 = vector.broadcast %cst_110 : f32 to vector<16x1xf32>
    %357 = arith.addf %353, %356 : vector<16x1xf32>
    %358 = math.rsqrt %357 : vector<16x1xf32>
    %359 = vector.broadcast %358 : vector<16x1xf32> to vector<16x32xf32>
    %360 = arith.mulf %355, %359 : vector<16x32xf32>
    %361 = vector.broadcast %201 : vector<1x32xf32> to vector<16x32xf32>
    %362 = arith.mulf %360, %361 : vector<16x32xf32>
    %363 = vector.broadcast %202 : vector<1x32xf32> to vector<16x32xf32>
    %364 = arith.addf %362, %363 : vector<16x32xf32>
    %365 = arith.truncf %364 : vector<16x32xf32> to vector<16x32xbf16>
    %c0_111 = arith.constant 0 : index
    %c0_112 = arith.constant 0 : index
    %366 = vector.load %arg8[%c0_111, %c0_112] : memref<32x128xbf16, #tpu.memory_space<vmem>>, vector<32x128xbf16>
    %cst_113 = arith.constant dense<0.000000e+00> : vector<16x128xf32>
    %367 = tpu.matmul %365, %366, %cst_113 {dimension_numbers = #tpu.dot_dimension_numbers<[1], [0], [0], [1], [0, 0, 1, 1], [], []>} : vector<16x32xbf16>, vector<32x128xbf16>, vector<16x128xf32> -> vector<16x128xf32>
    %c0_114 = arith.constant 0 : index
    %c0_115 = arith.constant 0 : index
    %368 = vector.load %arg9[%c0_114, %c0_115] : memref<1x128xf32, #tpu.memory_space<vmem>>, vector<1x128xf32>
    %369 = vector.broadcast %368 : vector<1x128xf32> to vector<16x128xf32>
    %370 = arith.addf %367, %369 : vector<16x128xf32>
    %c0_116 = arith.constant 0 : index
    %c0_117 = arith.constant 0 : index
    %371 = vector.load %arg10[%c0_116, %c0_117] : memref<16x128xf32, #tpu.memory_space<vmem>>, vector<16x128xf32>
    tpu.vector_store %arg10[%c0_116, %c0_117], %370 {strides = array<i32>} : memref<16x128xf32, #tpu.memory_space<vmem>>, vector<16x128xf32>,
    return
  }
}

</mosaic_0001>

<bundles_post_ra>
// kernel: transformer_forward.1
= control target key start
LH: loop header
LB: loop body
LE: loop exit
PB: predicated region body
PF: predicated region fallthrough
CT: control target
= control target key end

     0   :  { %15 = vsyncpa [#allocation3], 0  ;;  %s3345_s0 = inlined_call_operand.hbm [shape: f32[16,32], index: 0, kind: input, shape index: {}]   ;;  %s3346_s1 = inlined_call_operand.hbm [shape: f32[8,32], index: 1, kind: input, shape index: {}]   ;;  %s3347_s2 = inlined_call_operand.hbm [shape: f32[16,16], index: 2, kind: input, shape index: {}]   ;;  %s3348_s3 = inlined_call_operand.vmem [shape: bf16[2,32,96], index: 3, kind: input, shape index: {}]   ;;  %s3349_s4 = inlined_call_operand.vmem [shape: bf16[2,32,32], index: 4, kind: input, shape index: {}]   ;;  %s3350_s5 = inlined_call_operand.vmem [shape: bf16[2,32,64], index: 5, kind: input, shape index: {}]   ;;  %s3351_s6 = inlined_call_operand.vmem [shape: bf16[2,64,32], index: 6, kind: input, shape index: {}]   ;;  %s3352_s7 = inlined_call_operand.vmem [shape: f32[2,8,96], index: 7, kind: input, shape index: {}]   ;;  %s3353_s8 = inlined_call_operand.vmem [shape: bf16[32,128], index: 8, kind: input, shape index: {}]   ;;  %s3354_s9 = inlined_call_operand.vmem [shape: f32[1,128], index: 9, kind: input, shape index: {}]   ;;  %s3355_s10 = inlined_call_operand.vmem [shape: f32[16,128], index: 10, kind: output, shape index: {}]  }
   0x1   :  { %16 = vsyncpa [#allocation5], 0  ;;  %s2782_s13 = smov [#allocation4]   ;;  %s2783_s15 = smov [#allocation2]  }
   0x2   :  { %s35_s14 = sshll.u32 %s2782_s13, 4  ;;  %s22_s16 = sshll.u32 %s2783_s15, 4  ;;  %s36_s14 = int_to_ptr.vmem [resolvable:$true] %s35_s14  ;;  %s2852_s16 = int_to_ptr.vmem [resolvable:$true] %s22_s16 }
   0x3   :  { %s2712_s19 = scalar_lea.hbm %s3346_s1, 128 }
   0x4   :  { %p2713_p0 = scmp.ne.s32.totalorder %s3346_s1, %s2712_s19  ;;  %p2716_p1 = scmp.lt.u32.totalorder %s2712_s19, %s3346_s1 }
   0x6   :  { %p2718_p2 = pnand %p2716_p1, %p2713_p0 }
   0x8   :  { %2721 = shalt.err (!%p2718_p2)
}
   0x9   :  { %s2722_s24 = scalar_lea.vmem %s36_s14, 128  ;;  %p2727_p4 = scmp.lt.s32.totalorder %s36_s14, %s36_s14 }
   0xa   :  { %p2723_p3 = scmp.ne.s32.totalorder %s36_s14, %s2722_s24  ;;  %p2728_p5 = scmp.lt.s32.totalorder %s2722_s24, %s2722_s24 }
   0xc   :  { %p2729_p6 = por %p2728_p5, %p2727_p4 }
   0xe   :  { %p2730_p7 = pnand %p2729_p6, %p2723_p3 }
  0x10   :  { %2733 = shalt.err (!%p2730_p7)
}
  0x11   :  { %38 = dma.hbm_to_vmem [thread:$0]  %s3346_s1, 128, %s36_s14, [#allocation5]  }
  0x12   :  { %s2734_s29 = scalar_lea.hbm %s3345_s0, 256 }
  0x13   :  { %p2735_p8 = scmp.ne.s32.totalorder %s3345_s0, %s2734_s29  ;;  %p2738_p9 = scmp.lt.u32.totalorder %s2734_s29, %s3345_s0 }
  0x15   :  { %p2740_p10 = pnand %p2738_p9, %p2735_p8 }
  0x17   :  { %2743 = shalt.err (!%p2740_p10)
}
  0x18   :  { %s2744_s15 = scalar_lea.vmem %s2852_s16, 256  ;;  %p2749_p12 = scmp.lt.s32.totalorder %s2852_s16, %s2852_s16 }
  0x19   :  { %p2745_p11 = scmp.ne.s32.totalorder %s2852_s16, %s2744_s15  ;;  %p2750_p13 = scmp.lt.s32.totalorder %s2744_s15, %s2744_s15 }
  0x1b   :  { %p2751_p0 = por %p2750_p13, %p2749_p12 }
  0x1d   :  { %p2752_p1 = pnand %p2751_p0, %p2745_p11 }
  0x1f   :  { %2755 = shalt.err (!%p2752_p1)
}
  0x20   :  { %s2784_s1 = smov 128   ;;  %s2785_s14 = smov 8  }
  0x21   :  { %28 = dma.hbm_to_vmem [thread:$0]  %s3345_s0, 256, %s2852_s16, [#allocation3], %s2784_s1, %s2784_s1, %s2785_s14  }
  0x22   :  { %s2786_s19 = smov [#allocation6]   ;;  %s2756_s23 = scalar_lea.hbm %s3347_s2, 256 }
  0x23   :  { %s44_s20 = sshll.u32 %s2786_s19, 4  ;;  %p2757_p2 = scmp.ne.s32.totalorder %s3347_s2, %s2756_s23  ;;  %s45_s20 = int_to_ptr.vmem [resolvable:$true] %s44_s20 }
  0x24   :  { %p2760_p3 = scmp.lt.u32.totalorder %s2756_s23, %s3347_s2 }
  0x26   :  { %p2762_p4 = pnand %p2760_p3, %p2757_p2 }
  0x28   :  { %2765 = shalt.err (!%p2762_p4)
}
  0x29   :  { %s2766_s28 = scalar_lea.vmem %s45_s20, 256  ;;  %p2771_p6 = scmp.lt.s32.totalorder %s45_s20, %s45_s20 }
  0x2a   :  { %p2767_p5 = scmp.ne.s32.totalorder %s45_s20, %s2766_s28  ;;  %p2772_p7 = scmp.lt.s32.totalorder %s2766_s28, %s2766_s28 }
  0x2c   :  { %p2773_p8 = por %p2772_p7, %p2771_p6 }
  0x2e   :  { %p2774_p9 = pnand %p2773_p8, %p2767_p5 }
  0x30   :  { %2777 = shalt.err (!%p2774_p9)
}
  0x31   :  { %50 = dma.hbm_to_vmem [thread:$0]  %s3347_s2, 256, %s45_s20, [#allocation5], %s2784_s1, %s2784_s1, %s2785_s14  }
  0x32   :  { %2778 = dma.done.wait [#allocation3], 256  }
  0x33   :  { %2779 = vsyncadd [#allocation3], 4294967040 }
  0x34   :  { %2780 = dma.done.wait [#allocation5], 384  }
  0x35   :  { %2781 = vsyncadd [#allocation5], 4294966912  ;;  %v2787_v0 = vmov 0.0   ;;  %vm2788_vm0 = vmmov 0   ;;  %v2612_v1 = vld [vmem:[%s3348_s3] sm:$0xff]   ;;  %v2613_v2 = vld [vmem:[%s3348_s3 + $0x8] sm:$0xff]   ;;  %v104_v9 = vlaneseq }
  0x36   :  { %2389 = vmatprep.subr.bf16.mxu0 %v2787_v0  ;;  %2393 = vmatprep.mubr.msk.bf16.mxu0 %vm2788_vm0, %v2787_v0  ;;  %v75_v3 = vld [vmem:[#allocation4] sm:$0xff]  ;;  %v76_v4 = vld [vmem:[#allocation2] sm:$0xff]  ;;  %v77_v5 = vld [vmem:[#allocation2 + $0x8] sm:$0xff]  ;;  %vm120_vm1 = vcmask 261120   ;;  %s2789_s15 = smov 96   ;;  %s2790_s1 = smov 120  }
  0x37   :  { %2397 = vmatprep.subr.bf16.mxu1 %v2787_v0  ;;  %2399 = vmatprep.mubr.msk.bf16.mxu1 %vm2788_vm0, %v2787_v0  ;;  %v2908_v6 = vadd.f32 %v76_v4, %v75_v3  ;;  %v2910_v7 = vadd.f32 %v77_v5, %v75_v3  ;;  %v2918_v10 = vshrl.u32 %v104_v9, 7  ;;  %v2924_v12 = vld [vmem:[%s3352_s7] sm:$0xff]  ;;  %vm212_vm2 = vcmask 1043456   ;;  %v2946_v31 = vld [vmem:[#allocation6] sm:$0xff]  ;;  %s2791_s14 = smov 64   ;;  %s2792_s17 = smov 56  }
  0x38   :  { %2390 = vmatpush3.bf16.msra.mxu0 %v2612_v1  ;;  %vm208_vm3 = vcmask 64512   ;;  %vm261_vm4 = vcmask 130048   ;;  %v2948_v36 = vld [vmem:[#allocation6 + $0x8] sm:$0xff]  ;;  %s2793_s18 = smov 112   ;;  %s2794_s23 = smov 104   ;;  %vm1041_vm5 = vcmask 523264  }
  0x39   :  { %2391 = vmatprep.subr.bf16.mxu0 %v2787_v0  ;;  %v103_v8 = vpack.c.bf16 %v2910_v7, %v2908_v6  ;;  %v106_v11 = vsub.s32 0, %v2918_v10  ;;  %s2795_s24 = smov 48   ;;  %s2796_s27 = smov 40  }
  0x3b   :  { %v107_v13 = vrot.slane %v2924_v12, %v106_v11 }
  0x3c   :  { %2392 = vmatpush3.bf16.msra.mxu0 %v2613_v2 }
  0x3d   :  { %2409 = vmatprep.subr.bf16.mxu0 %v2787_v0 }
  0x3f   :  { %2394 = vmatmul.mubr.msk.bf16.vlgmr.msra.gmra.mrb[0].mxu0 %vm120_vm1, %v103_v8 }
  0x40   :  { %2411 = vmatprep.mubr.msk.bf16.mxu0 %vm2788_vm0, %v2787_v0 }
 0x112   :  { %v158_v14 = vpop.f32.mrb[0].mxu0 }
 0x113   :  { %v159_v15 = vadd.f32 %v158_v14, %v107_v13  ;;  %v2395_v16 = vpop.f32.mrb[1].mxu0 }
 0x114   :  { %v161_v17 = vpop.f32.mrb[2].mxu0 }
 0x115   :  { %v162_v18 = vadd.f32 %v161_v17, %v107_v13  ;;  %168 = vrot.lane.b32.xlu0 %v159_v15, %s2789_s15  ;;  %v2396_v19 = vpop.f32.mrb[3].mxu0 }
 0x117   :  { %v2930_v20 = vpack.c.bf16 %v162_v18, %v159_v15 }
 0x119   :  { %170 = vrot.lane.b32.xlu0 %v162_v18, %s2789_s15  ;;  %334 = vrot.lane.b32.xlu1 %v2930_v20, %s2790_s1 }
 0x187   :  { %v169_v21 = vpop.permute.xlu0 %168 }
 0x188   :  { %174 = vxpose.xlu1.b32.start [1/2] (short) (narrow) %v169_v21, 32 }
 0x18b   :  { %v171_v22 = vpop.permute.xlu0 %170  ;;  %v335_v23 = vpop.permute.xlu1 %334 }
 0x18c   :  { %175 = vxpose.xlu1.b32.end [2/2] (short) (narrow) %v171_v22, 32 }
 0x208   :  { %v190_v24 = vpop.trf.xlu1 }
 0x20c   :  { %v191_v25 = vpop.trf.xlu1 }
 0x20d   :  { %v206_v26 = vpack.c.bf16 %v191_v25, %v190_v24 }
 0x20f   :  { %v337_v27 = vrot.slane %v206_v26, 4  ;;  %v214_v28 = vsel %vm212_vm2, %v206_v26, 0 }
 0x210   :  { %2398 = vmatpush3.bf16.msra.mxu1 %v214_v28  ;;  %v192_v15 = vpop.trf.xlu1 }
 0x211   :  { %v342_v29 = vsel %vm212_vm2, %v337_v27, 0  ;;  %2403 = vmatprep.subr.bf16.mxu1 %v2787_v0 }
 0x212   :  { %2410 = vmatpush3.bf16.msra.mxu0 %v342_v29 }
 0x213   :  { %2400 = vmatmul.mubr.msk.bf16.vlgmr.msra.gmra.mrb[0].mxu1 %vm208_vm3, %v2930_v20  ;;  %2421 = vmatprep.subr.bf16.mxu0 %v2787_v0 }
 0x214   :  { %2405 = vmatprep.mubr.msk.bf16.mxu1 %vm2788_vm0, %v2787_v0  ;;  %v193_v16 = vpop.trf.xlu1 }
 0x215   :  { %2412 = vmatmul.mubr.msk.bf16.vlgmr.msra.gmra.mrb[4].mxu0 %vm208_vm3, %v335_v23 }
 0x216   :  { %2423 = vmatprep.mubr.msk.bf16.mxu0 %vm2788_vm0, %v2787_v0 }
 0x2e6   :  { %v250_v30 = vpop.f32.mrb[0].mxu1 }
 0x2e7   :  { %v257_v32 = vmul.f32 0.35355338, %v250_v30  ;;  %v2401_v33 = vpop.f32.mrb[1].mxu1 }
 0x2e8   :  { %v253_v34 = vpop.f32.mrb[2].mxu1  ;;  %v378_v35 = vpop.f32.mrb[4].mxu0 }
 0x2e9   :  { %v258_v37 = vmul.f32 0.35355338, %v253_v34  ;;  %v2402_v38 = vpop.f32.mrb[3].mxu1  ;;  %v2413_v39 = vpop.f32.mrb[5].mxu0  ;;  %v259_v40 = vadd.f32 %v257_v32, %v2946_v31  ;;  %v385_v42 = vmul.f32 0.35355338, %v378_v35 }
 0x2ea   :  { %v381_v41 = vpop.f32.mrb[6].mxu0  ;;  %v86_v34 = vld [vmem:[%s3349_s4] sm:$0xf] }
 0x2eb   :  { %v2414_v43 = vpop.f32.mrb[7].mxu0  ;;  %v262_v44 = vsel %vm261_vm4, %v259_v40, -inf  ;;  %v260_v45 = vadd.f32 %v258_v37, %v2948_v36  ;;  %v386_v46 = vmul.f32 0.35355338, %v381_v41  ;;  %v387_v48 = vadd.f32 %v385_v42, %v2946_v31  ;;  %v87_v37 = vld [vmem:[%s3349_s4 + $0x4] sm:$0xf] }
 0x2ec   :  { %263 = vmax.xlane.f32.xlu0 %v262_v44  ;;  %v511_v35 = vsel %vm212_vm2, %v86_v34, 0  ;;  %v464_v38 = vsel %vm212_vm2, %v87_v37, 0 }
 0x2ed   :  { %v265_v47 = vsel %vm261_vm4, %v260_v45, -inf  ;;  %v389_v49 = vsel %vm261_vm4, %v387_v48, -inf  ;;  %v388_v50 = vadd.f32 %v386_v46, %v2948_v36  ;;  %2422 = vmatpush3.bf16.msra.mxu0 %v464_v38  ;;  %v88_v38 = vld [vmem:[%s3349_s4 + $0x8] sm:$0xf] }
 0x2ee   :  { %2433 = vmatprep.subr.bf16.mxu0 %v2787_v0 }
 0x2ef   :  { %v392_v51 = vsel %vm261_vm4, %v388_v50, -inf }
 0x2f0   :  { %266 = vmax.xlane.f32.xlu0 %v265_v47 }
 0x2f4   :  { %390 = vmax.xlane.f32.xlu0 %v389_v49 }
 0x2f8   :  { %393 = vmax.xlane.f32.xlu0 %v392_v51 }
 0x30e   :  { %286 = vrot.lane.b32.xlu0 %v2930_v20, %s2791_s14 }
 0x379   :  { %v264_v52 = vpop.xlane.xlu0 %263 }
 0x37a   :  { %v268_v53 = vsub.f32 %v259_v40, %v264_v52 }
 0x37c   :  { %v270_v54 = vmul.f32 1.442695, %v268_v53 }
 0x37d   :  { %v267_v55 = vpop.xlane.xlu0 %266 }
 0x37e   :  { %2630 = vpow2.f32 %v270_v54  ;;  %v269_v56 = vsub.f32 %v260_v45, %v267_v55  ;;  %v2989_v45 = vpack.c.bf16 %v193_v16, %v192_v15 }
 0x380   :  { %v272_v57 = vmul.f32 1.442695, %v269_v56 }
 0x381   :  { %v391_v58 = vpop.xlane.xlu0 %390 }
 0x382   :  { %2632 = vpow2.f32 %v272_v57  ;;  %v395_v59 = vsub.f32 %v387_v48, %v391_v58 }
 0x384   :  { %v397_v60 = vmul.f32 1.442695, %v395_v59 }
 0x385   :  { %v394_v61 = vpop.xlane.xlu0 %393 }
 0x386   :  { %2634 = vpow2.f32 %v397_v60  ;;  %v396_v62 = vsub.f32 %v388_v50, %v394_v61  ;;  %v560_v50 = vsel %vm212_vm2, %v2989_v45, 0 }
 0x388   :  { %v2631_v63 = vpop.eup %2630  ;;  %v399_v1 = vmul.f32 1.442695, %v396_v62 }
 0x389   :  { %v287_v2 = vpop.permute.xlu0 %286  ;;  %v274_v3 = vsel %vm261_vm4, %v2631_v63, 0.0 }
 0x38a   :  { %2636 = vpow2.f32 %v399_v1  ;;  %275 = vadd.xlane.f32.xlu1 %v274_v3  ;;  %2404 = vmatpush3.bf16.msra.mxu1 %v287_v2 }
 0x38b   :  { %2415 = vmatprep.subr.bf16.mxu1 %v2787_v0 }
 0x38c   :  { %v2633_v4 = vpop.eup %2632 }
 0x38d   :  { %v277_v5 = vsel %vm261_vm4, %v2633_v4, 0.0 }
 0x38e   :  { %278 = vadd.xlane.f32.xlu0 %v277_v5 }
 0x390   :  { %v2635_v8 = vpop.eup %2634 }
 0x391   :  { %v401_v9 = vsel %vm261_vm4, %v2635_v8, 0.0 }
 0x392   :  { %402 = vadd.xlane.f32.xlu0 %v401_v9 }
 0x394   :  { %v2637_v13 = vpop.eup %2636 }
 0x395   :  { %v404_v14 = vsel %vm261_vm4, %v2637_v13, 0.0 }
 0x396   :  { %405 = vadd.xlane.f32.xlu0 %v404_v14 }
 0x3ac   :  { %412 = vrot.lane.b32.xlu0 %v2930_v20, %s2792_s17 }
 0x3b0   :  { %554 = vrot.lane.b32.xlu0 %v2930_v20, %s2793_s18 }
 0x417   :  { %v276_v17 = vpop.xlane.xlu1 %275 }
 0x418   :  { %2638 = vrcp.f32 %v276_v17 }
 0x41b   :  { %v279_v18 = vpop.xlane.xlu0 %278 }
 0x41c   :  { %2640 = vrcp.f32 %v279_v18 }
 0x41f   :  { %v403_v19 = vpop.xlane.xlu0 %402 }
 0x420   :  { %2642 = vrcp.f32 %v403_v19 }
 0x422   :  { %v2639_v22 = vpop.eup %2638 }
 0x423   :  { %v406_v21 = vpop.xlane.xlu0 %405  ;;  %v282_v24 = vmul.f32 %v2639_v22, %v2631_v63 }
 0x424   :  { %2644 = vrcp.f32 %v406_v21 }
 0x426   :  { %v2641_v23 = vpop.eup %2640 }
 0x427   :  { %v283_v25 = vmul.f32 %v2641_v23, %v2633_v4  ;;  %v413_v27 = vpop.permute.xlu0 %412 }
 0x429   :  { %v284_v26 = vpack.c.bf16 %v283_v25, %v282_v24 }
 0x42a   :  { %v2643_v28 = vpop.eup %2642 }
 0x42b   :  { %2406 = vmatmul.mubr.msk.bf16.vlgmr.msra.gmra.mrb[4].mxu1 %vm261_vm4, %v284_v26  ;;  %v409_v30 = vmul.f32 %v2643_v28, %v2635_v8  ;;  %v555_v51 = vpop.permute.xlu0 %554 }
 0x42c   :  { %2416 = vmatpush3.bf16.msra.mxu1 %v413_v27  ;;  %2417 = vmatprep.mubr.msk.bf16.mxu1 %vm2788_vm0, %v2787_v0 }
 0x42d   :  { %2427 = vmatprep.subr.bf16.mxu1 %v2787_v0 }
 0x42e   :  { %v2645_v29 = vpop.eup %2644 }
 0x42f   :  { %v410_v32 = vmul.f32 %v2645_v29, %v2637_v13 }
 0x431   :  { %v411_v33 = vpack.c.bf16 %v410_v32, %v409_v30  ;;  %v730_v30 = vrot.slane %v2989_v45, 4 }
 0x433   :  { %2418 = vmatmul.mubr.msk.bf16.vlgmr.msra.gmra.mrb[8].mxu1 %vm261_vm4, %v411_v33 }
 0x434   :  { %2429 = vmatprep.mubr.msk.bf16.mxu1 %vm2788_vm0, %v2787_v0  ;;  %2428 = vmatpush3.bf16.msra.mxu1 %v511_v35  ;;  %v735_v35 = vsel %vm212_vm2, %v730_v30, 0 }
 0x435   :  { %2439 = vmatprep.subr.bf16.mxu1 %v2787_v0 }
 0x4fe   :  { %v326_v39 = vpop.f32.mrb[4].mxu1 }
 0x4ff   :  { %v2407_v40 = vpop.f32.mrb[5].mxu1 }
 0x500   :  { %v329_v41 = vpop.f32.mrb[6].mxu1 }
 0x501   :  { %v333_v42 = vpack.c.bf16 %v329_v41, %v326_v39  ;;  %v2408_v43 = vpop.f32.mrb[7].mxu1  ;;  %v682_v39 = vsel %vm212_vm2, %v88_v38, 0 }
 0x503   :  { %2430 = vmatmul.mubr.msk.bf16.vlgmr.msra.gmra.mrb[12].mxu1 %vm208_vm3, %v333_v42 }
 0x504   :  { %2441 = vmatprep.mubr.msk.bf16.mxu1 %vm2788_vm0, %v2787_v0 }
 0x506   :  { %v452_v44 = vpop.f32.mrb[8].mxu1 }
 0x507   :  { %v2419_v46 = vpop.f32.mrb[9].mxu1 }
 0x508   :  { %v455_v47 = vpop.f32.mrb[10].mxu1 }
 0x509   :  { %v459_v48 = vpack.c.bf16 %v455_v47, %v452_v44  ;;  %v2420_v49 = vpop.f32.mrb[11].mxu1 }
 0x50b   :  { %2424 = vmatmul.mubr.msk.bf16.vlgmr.msra.gmra.mrb[8].mxu0 %vm208_vm3, %v459_v48 }
 0x50c   :  { %2434 = vmatpush3.bf16.msra.mxu0 %v560_v50  ;;  %2435 = vmatprep.mubr.msk.bf16.mxu0 %vm2788_vm0, %v2787_v0 }
 0x50d   :  { %2445 = vmatprep.subr.bf16.mxu0 %v2787_v0 }
 0x513   :  { %2436 = vmatmul.mubr.msk.bf16.vlgmr.msra.gmra.mrb[12].mxu0 %vm208_vm3, %v555_v51 }
 0x514   :  { %2447 = vmatprep.mubr.msk.bf16.mxu0 %vm2788_vm0, %v2787_v0  ;;  %2446 = vmatpush3.bf16.msra.mxu0 %v682_v39 }
 0x515   :  { %2457 = vmatprep.subr.bf16.mxu0 %v2787_v0 }
 0x5d6   :  { %v547_v52 = vpop.f32.mrb[12].mxu1 }
 0x5d7   :  { %v2431_v53 = vpop.f32.mrb[13].mxu1 }
 0x5d8   :  { %v550_v54 = vpop.f32.mrb[14].mxu1 }
 0x5d9   :  { %v2432_v55 = vpop.f32.mrb[15].mxu1 }
 0x5de   :  { %v500_v56 = vpop.f32.mrb[8].mxu0 }
 0x5df   :  { %v3000_v57 = vadd.f32 %v547_v52, %v500_v56  ;;  %v2425_v58 = vpop.f32.mrb[9].mxu0 }
 0x5e0   :  { %v503_v59 = vpop.f32.mrb[10].mxu0 }
 0x5e1   :  { %v3002_v60 = vadd.f32 %v550_v54, %v503_v59  ;;  %v2426_v61 = vpop.f32.mrb[11].mxu0 }
 0x5e6   :  { %v596_v62 = vpop.f32.mrb[12].mxu0 }
 0x5e7   :  { %v603_v63 = vmul.f32 0.35355338, %v596_v62  ;;  %v2437_v1 = vpop.f32.mrb[13].mxu0 }
 0x5e8   :  { %v599_v2 = vpop.f32.mrb[14].mxu0 }
 0x5e9   :  { %v604_v3 = vmul.f32 0.35355338, %v599_v2  ;;  %v2438_v4 = vpop.f32.mrb[15].mxu0  ;;  %v605_v5 = vadd.f32 %v603_v63, %v2946_v31 }
 0x5eb   :  { %v607_v8 = vsel %vm261_vm4, %v605_v5, -inf  ;;  %v606_v9 = vadd.f32 %v604_v3, %v2948_v36 }
 0x5ec   :  { %608 = vmax.xlane.f32.xlu0 %v607_v8 }
 0x5ed   :  { %v610_v13 = vsel %vm261_vm4, %v606_v9, -inf }
 0x5ee   :  { %611 = vmax.xlane.f32.xlu1 %v610_v13 }
 0x602   :  { %727 = vrot.lane.b32.xlu0 %v2930_v20, %s2794_s23 }
 0x679   :  { %v609_v14 = vpop.xlane.xlu0 %608 }
 0x67a   :  { %v613_v15 = vsub.f32 %v605_v5, %v609_v14 }
 0x67b   :  { %v612_v16 = vpop.xlane.xlu1 %611 }
 0x67c   :  { %v615_v17 = vmul.f32 1.442695, %v613_v15  ;;  %v614_v18 = vsub.f32 %v606_v9, %v612_v16 }
 0x67d   :  { %v728_v37 = vpop.permute.xlu0 %727 }
 0x67e   :  { %2646 = vpow2.f32 %v615_v17  ;;  %v617_v19 = vmul.f32 1.442695, %v614_v18 }
 0x680   :  { %2648 = vpow2.f32 %v617_v19 }
 0x688   :  { %v2647_v21 = vpop.eup %2646 }
 0x689   :  { %v619_v22 = vsel %vm261_vm4, %v2647_v21, 0.0 }
 0x68a   :  { %v2649_v23 = vpop.eup %2648  ;;  %620 = vadd.xlane.f32.xlu1 %v619_v22 }
 0x68b   :  { %v622_v24 = vsel %vm261_vm4, %v2649_v23, 0.0 }
 0x68e   :  { %623 = vadd.xlane.f32.xlu1 %v622_v24 }
 0x69f   :  { %630 = vrot.lane.b32.xlu1 %v2930_v20, %s2795_s24 }
 0x717   :  { %v621_v25 = vpop.xlane.xlu1 %620 }
 0x718   :  { %2650 = vrcp.f32 %v621_v25 }
 0x71b   :  { %v624_v26 = vpop.xlane.xlu1 %623 }
 0x71c   :  { %2652 = vrcp.f32 %v624_v26 }
 0x71f   :  { %v631_v27 = vpop.permute.xlu1 %630 }
 0x720   :  { %2440 = vmatpush3.bf16.msra.mxu1 %v631_v27 }
 0x721   :  { %2451 = vmatprep.subr.bf16.mxu1 %v2787_v0 }
 0x722   :  { %v2651_v28 = vpop.eup %2650 }
 0x723   :  { %v627_v32 = vmul.f32 %v2651_v28, %v2647_v21  ;;  %v904_v28 = vsub.s32 2, %v2918_v10 }
 0x726   :  { %v2653_v29 = vpop.eup %2652 }
 0x727   :  { %v628_v33 = vmul.f32 %v2653_v29, %v2649_v23  ;;  %v905_v29 = vrot.slane %v2924_v12, %v904_v28 }
 0x729   :  { %v629_v34 = vpack.c.bf16 %v628_v33, %v627_v32 }
 0x72b   :  { %2442 = vmatmul.mubr.msk.bf16.vlgmr.msra.gmra.mrb[16].mxu1 %vm261_vm4, %v629_v34 }
 0x72c   :  { %2452 = vmatpush3.bf16.msra.mxu1 %v735_v35  ;;  %2453 = vmatprep.mubr.msk.bf16.mxu1 %vm2788_vm0, %v2787_v0 }
 0x72d   :  { %2463 = vmatprep.subr.bf16.mxu1 %v2787_v0 }
 0x733   :  { %2454 = vmatmul.mubr.msk.bf16.vlgmr.msra.gmra.mrb[20].mxu1 %vm208_vm3, %v728_v37 }
 0x734   :  { %2465 = vmatprep.mubr.msk.bf16.mxu1 %vm2788_vm0, %v2787_v0 }
 0x7fe   :  { %v670_v40 = vpop.f32.mrb[16].mxu1 }
 0x7ff   :  { %v2443_v41 = vpop.f32.mrb[17].mxu1 }
 0x800   :  { %v673_v42 = vpop.f32.mrb[18].mxu1 }
 0x801   :  { %v677_v43 = vpack.c.bf16 %v673_v42, %v670_v40  ;;  %v2444_v44 = vpop.f32.mrb[19].mxu1 }
 0x803   :  { %2448 = vmatmul.mubr.msk.bf16.vlgmr.msra.gmra.mrb[16].mxu0 %vm208_vm3, %v677_v43 }
 0x804   :  { %2459 = vmatprep.mubr.msk.bf16.mxu0 %vm2788_vm0, %v2787_v0 }
 0x806   :  { %v771_v45 = vpop.f32.mrb[20].mxu1 }
 0x807   :  { %v778_v46 = vmul.f32 0.35355338, %v771_v45  ;;  %v2455_v47 = vpop.f32.mrb[21].mxu1 }
 0x808   :  { %v774_v48 = vpop.f32.mrb[22].mxu1 }
 0x809   :  { %v779_v49 = vmul.f32 0.35355338, %v774_v48  ;;  %v2456_v50 = vpop.f32.mrb[23].mxu1  ;;  %v780_v51 = vadd.f32 %v778_v46, %v2946_v31 }
 0x80b   :  { %v782_v52 = vsel %vm261_vm4, %v780_v51, -inf  ;;  %v781_v53 = vadd.f32 %v779_v49, %v2948_v36 }
 0x80c   :  { %783 = vmax.xlane.f32.xlu1 %v782_v52 }
 0x80d   :  { %v785_v54 = vsel %vm261_vm4, %v781_v53, -inf }
 0x80e   :  { %786 = vmax.xlane.f32.xlu0 %v785_v54  ;;  %v2616_v54 = vld [vmem:[%s3351_s6] sm:$0xff]  }
 0x899   :  { %v784_v55 = vpop.xlane.xlu1 %783 }
 0x89a   :  { %v788_v56 = vsub.f32 %v780_v51, %v784_v55  ;;  %v2617_v55 = vld [vmem:[%s3351_s6 + $0x8] sm:$0xff]  }
 0x89b   :  { %v787_v58 = vpop.xlane.xlu0 %786 }
 0x89c   :  { %v790_v59 = vmul.f32 1.442695, %v788_v56  ;;  %v789_v61 = vsub.f32 %v781_v53, %v787_v58  ;;  %v2615_v53 = vld [vmem:[%s3350_s5 + $0x8] sm:$0xff]  }
 0x89e   :  { %2654 = vpow2.f32 %v790_v59  ;;  %v792_v62 = vmul.f32 1.442695, %v789_v61 }
 0x8a0   :  { %2656 = vpow2.f32 %v792_v62 }
 0x8a8   :  { %v2655_v63 = vpop.eup %2654 }
 0x8a9   :  { %v794_v1 = vsel %vm261_vm4, %v2655_v63, 0.0 }
 0x8aa   :  { %v2657_v2 = vpop.eup %2656  ;;  %795 = vadd.xlane.f32.xlu1 %v794_v1  ;;  %v939_v1 = vsub.s32 4, %v2918_v10 }
 0x8ab   :  { %v797_v3 = vsel %vm261_vm4, %v2657_v2, 0.0 }
 0x8ae   :  { %798 = vadd.xlane.f32.xlu1 %v797_v3  ;;  %v940_v3 = vrot.slane %v2924_v12, %v939_v1 }
 0x8bf   :  { %805 = vrot.lane.b32.xlu1 %v2930_v20, %s2796_s27 }
 0x8d6   :  { %v718_v4 = vpop.f32.mrb[16].mxu0 }
 0x8d7   :  { %v725_v5 = vadd.f32 %v718_v4, %v3000_v57  ;;  %v2449_v8 = vpop.f32.mrb[17].mxu0  ;;  %v89_v57 = vld [vmem:[%s3349_s4 + $0xc] sm:$0xf] }
 0x8d8   :  { %v721_v9 = vpop.f32.mrb[18].mxu0 }
 0x8d9   :  { %v726_v13 = vadd.f32 %v721_v9, %v3002_v60  ;;  %v2450_v14 = vpop.f32.mrb[19].mxu0  ;;  %v857_v60 = vsel %vm212_vm2, %v89_v57, 0 }
 0x8da   :  { %2464 = vmatpush3.bf16.msra.mxu1 %v857_v60 }
 0x8db   :  { %2477 = vmatprep.subr.bf16.mxu1 %v2787_v0 }
 0x937   :  { %v796_v15 = vpop.xlane.xlu1 %795 }
 0x938   :  { %2658 = vrcp.f32 %v796_v15 }
 0x93b   :  { %v799_v16 = vpop.xlane.xlu1 %798 }
 0x93c   :  { %2660 = vrcp.f32 %v799_v16 }
 0x93f   :  { %v806_v17 = vpop.permute.xlu1 %805 }
 0x940   :  { %2458 = vmatpush3.bf16.msra.mxu0 %v806_v17 }
 0x941   :  { %2469 = vmatprep.subr.bf16.mxu0 %v2787_v0 }
 0x942   :  { %v2659_v18 = vpop.eup %2658 }
 0x943   :  { %v802_v21 = vmul.f32 %v2659_v18, %v2655_v63 }
 0x946   :  { %v2661_v19 = vpop.eup %2660 }
 0x947   :  { %v803_v20 = vmul.f32 %v2661_v19, %v2657_v2  ;;  %v2618_v19 = vld [vmem:[%s3351_s6 + $0x10] sm:$0xff]  }
 0x949   :  { %v804_v22 = vpack.c.bf16 %v803_v20, %v802_v21  ;;  %v2619_v21 = vld [vmem:[%s3351_s6 + $0x18] sm:$0xff]   ;;  %v952_v20 = vsub.s32 1, %v2918_v10 }
 0x94b   :  { %2460 = vmatmul.mubr.msk.bf16.vlgmr.msra.gmra.mrb[20].mxu0 %vm261_vm4, %v804_v22  ;;  %v953_v22 = vrot.slane %v2924_v12, %v952_v20 }
 0x94c   :  { %2473 = vmatprep.mubr.msk.bf16.mxu0 %vm2788_vm0, %v2787_v0 }
 0xa1e   :  { %v845_v23 = vpop.f32.mrb[20].mxu0 }
 0xa1f   :  { %v2461_v24 = vpop.f32.mrb[21].mxu0 }
 0xa20   :  { %v848_v25 = vpop.f32.mrb[22].mxu0 }
 0xa21   :  { %v852_v26 = vpack.c.bf16 %v848_v25, %v845_v23  ;;  %v2462_v27 = vpop.f32.mrb[23].mxu0 }
 0xa23   :  { %2466 = vmatmul.mubr.msk.bf16.vlgmr.msra.gmra.mrb[24].mxu1 %vm208_vm3, %v852_v26 }
 0xa24   :  { %2485 = vmatprep.mubr.msk.bf16.mxu1 %vm2788_vm0, %v2787_v0  ;;  %2478 = vmatpush3.bf16.msra.mxu1 %v2616_v54  ;;  %v2621_v54 = vld [vmem:[%s3348_s3 + $0x18] sm:$0xff]  }
 0xa25   :  { %2479 = vmatprep.subr.bf16.mxu1 %v2787_v0 }
 0xa28   :  { %2480 = vmatpush3.bf16.msra.mxu1 %v2617_v55 }
 0xa29   :  { %2481 = vmatprep.subr.bf16.mxu1 %v2787_v0 }
 0xa2c   :  { %2482 = vmatpush3.bf16.msra.mxu1 %v2618_v19 }
 0xa2d   :  { %2483 = vmatprep.subr.bf16.mxu1 %v2787_v0 }
 0xa30   :  { %2484 = vmatpush3.bf16.msra.mxu1 %v2619_v21  ;;  %v3142_v21 = vld [vmem:[%s3352_s7 + $0x8] sm:$0xff] }
 0xa31   :  { %2503 = vmatprep.subr.bf16.mxu1 %v2787_v0 }
 0xaf6   :  { %v893_v30 = vpop.f32.mrb[24].mxu1 }
 0xaf7   :  { %v900_v32 = vadd.f32 %v893_v30, %v725_v5  ;;  %v2467_v33 = vpop.f32.mrb[25].mxu1  ;;  %v945_v5 = vsub.s32 5, %v2918_v10 }
 0xaf8   :  { %v896_v34 = vpop.f32.mrb[26].mxu1 }
 0xaf9   :  { %v906_v35 = vadd.f32 %v905_v29, %v900_v32  ;;  %v901_v37 = vadd.f32 %v896_v34, %v726_v13  ;;  %v2468_v38 = vpop.f32.mrb[27].mxu1  ;;  %v946_v14 = vrot.slane %v2924_v12, %v945_v5  ;;  %v1015_v32 = vsub.s32 3, %v2918_v10 }
 0xafb   :  { %v907_v39 = vadd.f32 %v905_v29, %v901_v37  ;;  %v908_v40 = vadd.f32 %v906_v35, %v2908_v6  ;;  %v1016_v33 = vrot.slane %v2924_v12, %v1015_v32 }
 0xafd   :  { %v910_v41 = vsel %vm120_vm1, %v908_v40, 0.0  ;;  %v909_v42 = vadd.f32 %v907_v39, %v2910_v7  ;;  %v2614_v7 = vld [vmem:[%s3350_s5] sm:$0xff]  }
 0xafe   :  { %911 = vadd.xlane.f32.xlu0 %v910_v41  ;;  %2470 = vmatpush3.bf16.msra.mxu0 %v2614_v7 }
 0xaff   :  { %v913_v43 = vsel %vm120_vm1, %v909_v42, 0.0  ;;  %2471 = vmatprep.subr.bf16.mxu0 %v2787_v0 }
 0xb02   :  { %914 = vadd.xlane.f32.xlu0 %v913_v43  ;;  %2472 = vmatpush3.bf16.msra.mxu0 %v2615_v53  ;;  %v2620_v53 = vld [vmem:[%s3348_s3 + $0x10] sm:$0xff]  }
 0xb03   :  { %2489 = vmatprep.subr.bf16.mxu0 %v2787_v0 }
 0xb8b   :  { %v912_v44 = vpop.xlane.xlu0 %911 }
 0xb8c   :  { %v917_v45 = vmul.f32 0.03125, %v912_v44 }
 0xb8e   :  { %v919_v46 = vsub.f32 %v908_v40, %v917_v45 }
 0xb8f   :  { %v915_v47 = vpop.xlane.xlu0 %914 }
 0xb90   :  { %v918_v48 = vmul.f32 0.03125, %v915_v47  ;;  %v921_v49 = vmul.f32 %v919_v46, %v919_v46 }
 0xb92   :  { %v920_v50 = vsub.f32 %v909_v42, %v918_v48  ;;  %v923_v51 = vsel %vm120_vm1, %v921_v49, 0.0 }
 0xb93   :  { %924 = vadd.xlane.f32.xlu0 %v923_v51 }
 0xb94   :  { %v922_v52 = vmul.f32 %v920_v50, %v920_v50 }
 0xb96   :  { %v926_v6 = vsel %vm120_vm1, %v922_v52, 0.0 }
 0xb97   :  { %927 = vadd.xlane.f32.xlu1 %v926_v6 }
 0xc20   :  { %v925_v56 = vpop.xlane.xlu0 %924 }
 0xc21   :  { %v929_v58 = vmul.f32 0.03125, %v925_v56 }
 0xc23   :  { %v931_v59 = vadd.f32 1e-05, %v929_v58 }
 0xc24   :  { %v928_v61 = vpop.xlane.xlu1 %927 }
 0xc25   :  { %2662 = vrsqrt.f32 %v931_v59  ;;  %v930_v62 = vmul.f32 0.03125, %v928_v61 }
 0xc27   :  { %v932_v63 = vadd.f32 1e-05, %v930_v62 }
 0xc29   :  { %2664 = vrsqrt.f32 %v932_v63  ;;  %v1116_v63 = vsub.s32 6, %v2918_v10 }
 0xc2f   :  { %v2663_v2 = vpop.eup %2662 }
 0xc30   :  { %v935_v4 = vmul.f32 %v2663_v2, %v919_v46 }
 0xc32   :  { %v941_v9 = vmul.f32 %v940_v3, %v935_v4 }
 0xc33   :  { %v2665_v8 = vpop.eup %2664 }
 0xc34   :  { %v936_v13 = vmul.f32 %v2665_v8, %v920_v50  ;;  %v947_v16 = vadd.f32 %v946_v14, %v941_v9  ;;  %v1122_v8 = vsub.s32 7, %v2918_v10 }
 0xc36   :  { %v942_v15 = vmul.f32 %v940_v3, %v936_v13  ;;  %v1117_v3 = vrot.slane %v2924_v12, %v1116_v63 }
 0xc38   :  { %v948_v17 = vadd.f32 %v946_v14, %v942_v15  ;;  %v1123_v15 = vrot.slane %v2924_v12, %v1122_v8  ;;  %v1156_v12 = vrot.slane %v3142_v21, %v106_v11 }
 0xc3a   :  { %v949_v18 = vpack.c.bf16 %v948_v17, %v947_v16 }
 0xc3c   :  { %2474 = vmatmul.mubr.msk.bf16.vlgmr.msra.gmra.mrb[24].mxu0 %vm120_vm1, %v949_v18 }
 0xc3d   :  { %2493 = vmatprep.mubr.msk.bf16.mxu0 %vm2788_vm0, %v2787_v0  ;;  %2490 = vmatpush3.bf16.msra.mxu0 %v2620_v53 }
 0xc3e   :  { %2491 = vmatprep.subr.bf16.mxu0 %v2787_v0 }
 0xc41   :  { %2492 = vmatpush3.bf16.msra.mxu0 %v2621_v54 }
 0xc42   :  { %2497 = vmatprep.subr.bf16.mxu0 %v2787_v0 }
 0xd0f   :  { %v1003_v57 = vpop.f32.mrb[24].mxu0 }
 0xd10   :  { %v1004_v60 = vadd.f32 %v1003_v57, %v953_v22  ;;  %v2475_v23 = vpop.f32.mrb[25].mxu0 }
 0xd11   :  { %v1006_v24 = vpop.f32.mrb[26].mxu0 }
 0xd12   :  { %v1007_v25 = vadd.f32 %v1006_v24, %v953_v22  ;;  %v2476_v26 = vpop.f32.mrb[27].mxu0  ;;  %v1010_v27 = vmax.f32 %v1004_v60, 0.0 }
 0xd14   :  { %v1011_v29 = vmax.f32 %v1007_v25, 0.0 }
 0xd16   :  { %v1012_v30 = vpack.c.bf16 %v1011_v29, %v1010_v27 }
 0xd18   :  { %2486 = vmatmul.mubr.msk.bf16.vlgmr.msra.gmra.mrb[28].mxu1 %vm1041_vm5, %v1012_v30 }
 0xd19   :  { %2505 = vmatprep.mubr.msk.bf16.mxu1 %vm2788_vm0, %v2787_v0 }
 0xdeb   :  { %v1079_v34 = vpop.f32.mrb[28].mxu1 }
 0xdec   :  { %v1080_v35 = vadd.f32 %v1079_v34, %v1016_v33  ;;  %v2487_v37 = vpop.f32.mrb[29].mxu1 }
 0xded   :  { %v1082_v38 = vpop.f32.mrb[30].mxu1 }
 0xdee   :  { %v1083_v39 = vadd.f32 %v1082_v38, %v1016_v33  ;;  %v2488_v40 = vpop.f32.mrb[31].mxu1  ;;  %v1086_v41 = vadd.f32 %v1080_v35, %v947_v16 }
 0xdf0   :  { %v1088_v42 = vsel %vm120_vm1, %v1086_v41, 0.0  ;;  %v1087_v43 = vadd.f32 %v1083_v39, %v948_v17 }
 0xdf1   :  { %1089 = vadd.xlane.f32.xlu0 %v1088_v42 }
 0xdf2   :  { %v1091_v44 = vsel %vm120_vm1, %v1087_v43, 0.0 }
 0xdf5   :  { %1092 = vadd.xlane.f32.xlu0 %v1091_v44 }
 0xe7e   :  { %v1090_v45 = vpop.xlane.xlu0 %1089 }
 0xe7f   :  { %v1094_v46 = vmul.f32 0.03125, %v1090_v45 }
 0xe81   :  { %v1096_v47 = vsub.f32 %v1086_v41, %v1094_v46 }
 0xe82   :  { %v1093_v48 = vpop.xlane.xlu0 %1092 }
 0xe83   :  { %v1095_v49 = vmul.f32 0.03125, %v1093_v48  ;;  %v1098_v50 = vmul.f32 %v1096_v47, %v1096_v47 }
 0xe85   :  { %v1097_v51 = vsub.f32 %v1087_v43, %v1095_v49  ;;  %v1100_v52 = vsel %vm120_vm1, %v1098_v50, 0.0 }
 0xe86   :  { %1101 = vadd.xlane.f32.xlu0 %v1100_v52 }
 0xe87   :  { %v1099_v6 = vmul.f32 %v1097_v51, %v1097_v51 }
 0xe89   :  { %v1103_v7 = vsel %vm120_vm1, %v1099_v6, 0.0 }
 0xe8a   :  { %1104 = vadd.xlane.f32.xlu0 %v1103_v7 }
 0xf13   :  { %v1102_v55 = vpop.xlane.xlu0 %1101 }
 0xf14   :  { %v1106_v56 = vmul.f32 0.03125, %v1102_v55 }
 0xf16   :  { %v1108_v58 = vadd.f32 1e-05, %v1106_v56 }
 0xf17   :  { %v1105_v59 = vpop.xlane.xlu0 %1104 }
 0xf18   :  { %2666 = vrsqrt.f32 %v1108_v58  ;;  %v1107_v61 = vmul.f32 0.03125, %v1105_v59 }
 0xf1a   :  { %v1109_v62 = vadd.f32 1e-05, %v1107_v61 }
 0xf1c   :  { %2668 = vrsqrt.f32 %v1109_v62 }
 0xf22   :  { %v2667_v2 = vpop.eup %2666 }
 0xf23   :  { %v1112_v4 = vmul.f32 %v2667_v2, %v1096_v47 }
 0xf25   :  { %v1118_v13 = vmul.f32 %v1117_v3, %v1112_v4 }
 0xf26   :  { %v2669_v9 = vpop.eup %2668 }
 0xf27   :  { %v1113_v14 = vmul.f32 %v2669_v9, %v1097_v51  ;;  %v3130_v17 = vadd.f32 %v1123_v15, %v1118_v13 }
 0xf29   :  { %v1119_v16 = vmul.f32 %v1117_v3, %v1113_v14 }
 0xf2b   :  { %v3132_v18 = vadd.f32 %v1123_v15, %v1119_v16 }
 0xf2d   :  { %v1152_v19 = vpack.c.bf16 %v3132_v18, %v3130_v17 }
 0xf2f   :  { %2494 = vmatmul.mubr.msk.bf16.vlgmr.msra.gmra.mrb[28].mxu0 %vm120_vm1, %v1152_v19 }
 0xf30   :  { %2499 = vmatprep.mubr.msk.bf16.mxu0 %vm2788_vm0, %v2787_v0 }
0x1002   :  { %v1206_v22 = vpop.f32.mrb[28].mxu0 }
0x1003   :  { %v1207_v57 = vadd.f32 %v1206_v22, %v1156_v12  ;;  %v2495_v60 = vpop.f32.mrb[29].mxu0 }
0x1004   :  { %v1209_v23 = vpop.f32.mrb[30].mxu0 }
0x1005   :  { %v1210_v24 = vadd.f32 %v1209_v23, %v1156_v12  ;;  %1216 = vrot.lane.b32.xlu0 %v1207_v57, %s2789_s15  ;;  %v2496_v25 = vpop.f32.mrb[31].mxu0 }
0x1007   :  { %v3148_v26 = vpack.c.bf16 %v1210_v24, %v1207_v57  ;;  %1218 = vrot.lane.b32.xlu1 %v1210_v24, %s2789_s15 }
0x1009   :  { %1379 = vrot.lane.b32.xlu0 %v3148_v26, %s2790_s1 }
0x1077   :  { %v1217_v27 = vpop.permute.xlu0 %1216 }
0x1078   :  { %1222 = vxpose.xlu0.b32.start [1/2] (short) (narrow) %v1217_v27, 32 }
0x1079   :  { %v1219_v29 = vpop.permute.xlu1 %1218 }
0x107b   :  { %v1380_v11 = vpop.permute.xlu0 %1379 }
0x107c   :  { %1223 = vxpose.xlu0.b32.end [2/2] (short) (narrow) %v1219_v29, 32 }
0x10f8   :  { %v1238_v30 = vpop.trf.xlu0 }
0x10fc   :  { %v1239_v33 = vpop.trf.xlu0 }
0x10fd   :  { %v1254_v34 = vpack.c.bf16 %v1239_v33, %v1238_v30 }
0x10ff   :  { %v1260_v35 = vsel %vm212_vm2, %v1254_v34, 0  ;;  %v1382_v37 = vrot.slane %v1254_v34, 4 }
0x1100   :  { %2498 = vmatpush3.bf16.msra.mxu0 %v1260_v35  ;;  %v3176_v58 = vpop.trf.xlu0 }
0x1101   :  { %2509 = vmatprep.subr.bf16.mxu0 %v2787_v0  ;;  %v1387_v38 = vsel %vm212_vm2, %v1382_v37, 0 }
0x1103   :  { %2500 = vmatmul.mubr.msk.bf16.vlgmr.msra.gmra.mrb[32].mxu0 %vm208_vm3, %v3148_v26 }
0x1104   :  { %2510 = vmatpush3.bf16.msra.mxu0 %v1387_v38  ;;  %2511 = vmatprep.mubr.msk.bf16.mxu0 %vm2788_vm0, %v2787_v0  ;;  %v3178_v59 = vpop.trf.xlu0 }
0x1105   :  { %2521 = vmatprep.subr.bf16.mxu0 %v2787_v0 }
0x110b   :  { %2512 = vmatmul.mubr.msk.bf16.vlgmr.msra.gmra.mrb[36].mxu0 %vm208_vm3, %v1380_v11 }
0x110c   :  { %2523 = vmatprep.mubr.msk.bf16.mxu0 %vm2788_vm0, %v2787_v0 }
0x11d6   :  { %v1296_v39 = vpop.f32.mrb[32].mxu0 }
0x11d7   :  { %v1303_v40 = vmul.f32 0.35355338, %v1296_v39  ;;  %v2501_v41 = vpop.f32.mrb[33].mxu0 }
0x11d8   :  { %v1299_v42 = vpop.f32.mrb[34].mxu0 }
0x11d9   :  { %v1304_v43 = vmul.f32 0.35355338, %v1299_v42  ;;  %v2502_v44 = vpop.f32.mrb[35].mxu0  ;;  %v1305_v45 = vadd.f32 %v1303_v40, %v2946_v31 }
0x11db   :  { %v1307_v46 = vsel %vm261_vm4, %v1305_v45, -inf  ;;  %v1306_v47 = vadd.f32 %v1304_v43, %v2948_v36 }
0x11dc   :  { %1308 = vmax.xlane.f32.xlu1 %v1307_v46  ;;  %v2272_v46 = vld [vmem:[%s3349_s4 + $0x10] sm:$0xf] }
0x11dd   :  { %v1310_v48 = vsel %vm261_vm4, %v1306_v47, -inf }
0x11de   :  { %1311 = vmax.xlane.f32.xlu0 %v1310_v48  ;;  %v1423_v49 = vpop.f32.mrb[36].mxu0  ;;  %v2273_v48 = vld [vmem:[%s3349_s4 + $0x14] sm:$0xf] }
0x11df   :  { %v1430_v50 = vmul.f32 0.35355338, %v1423_v49  ;;  %v2513_v51 = vpop.f32.mrb[37].mxu0  ;;  %v1509_v49 = vsel %vm212_vm2, %v2273_v48, 0 }
0x11e0   :  { %v1426_v52 = vpop.f32.mrb[38].mxu0  ;;  %2522 = vmatpush3.bf16.msra.mxu0 %v1509_v49 }
0x11e1   :  { %v1431_v6 = vmul.f32 0.35355338, %v1426_v52  ;;  %v2514_v7 = vpop.f32.mrb[39].mxu0  ;;  %v1432_v53 = vadd.f32 %v1430_v50, %v2946_v31  ;;  %2533 = vmatprep.subr.bf16.mxu0 %v2787_v0 }
0x11e3   :  { %v1434_v54 = vsel %vm261_vm4, %v1432_v53, -inf  ;;  %v1433_v55 = vadd.f32 %v1431_v6, %v2948_v36 }
0x11e4   :  { %1435 = vmax.xlane.f32.xlu1 %v1434_v54  ;;  %v3209_v54 = vpack.c.bf16 %v3178_v59, %v3176_v58 }
0x11e5   :  { %v1437_v56 = vsel %vm261_vm4, %v1433_v55, -inf }
0x11e6   :  { %v1775_v49 = vrot.slane %v3209_v54, 4 }
0x11e8   :  { %1438 = vmax.xlane.f32.xlu1 %v1437_v56 }
0x11f4   :  { %1599 = vrot.lane.b32.xlu0 %v3148_v26, %s2793_s18 }
0x11f9   :  { %1331 = vrot.lane.b32.xlu1 %v3148_v26, %s2791_s14 }
0x1269   :  { %v1309_v61 = vpop.xlane.xlu1 %1308 }
0x126a   :  { %v1313_v31 = vsub.f32 %v1305_v45, %v1309_v61 }
0x126b   :  { %v1312_v62 = vpop.xlane.xlu0 %1311 }
0x126c   :  { %v1315_v2 = vmul.f32 1.442695, %v1313_v31  ;;  %v1314_v3 = vsub.f32 %v1306_v47, %v1312_v62  ;;  %v1556_v47 = vsel %vm212_vm2, %v2272_v46, 0  ;;  %v1605_v62 = vsel %vm212_vm2, %v3209_v54, 0 }
0x126e   :  { %2670 = vpow2.f32 %v1315_v2  ;;  %v1317_v36 = vmul.f32 1.442695, %v1314_v3 }
0x126f   :  { %v1600_v2 = vpop.permute.xlu0 %1599 }
0x1270   :  { %2672 = vpow2.f32 %v1317_v36 }
0x1271   :  { %v1436_v4 = vpop.xlane.xlu1 %1435 }
0x1272   :  { %v1440_v9 = vsub.f32 %v1432_v53, %v1436_v4 }
0x1274   :  { %v1442_v13 = vmul.f32 1.442695, %v1440_v9 }
0x1275   :  { %v1439_v14 = vpop.xlane.xlu1 %1438 }
0x1276   :  { %2674 = vpow2.f32 %v1442_v13  ;;  %v1441_v15 = vsub.f32 %v1433_v55, %v1439_v14 }
0x1278   :  { %v2671_v16 = vpop.eup %2670  ;;  %v1444_v19 = vmul.f32 1.442695, %v1441_v15 }
0x1279   :  { %v1332_v12 = vpop.permute.xlu1 %1331  ;;  %v1319_v22 = vsel %vm261_vm4, %v2671_v16, 0.0 }
0x127a   :  { %v2673_v57 = vpop.eup %2672  ;;  %2676 = vpow2.f32 %v1444_v19  ;;  %1320 = vadd.xlane.f32.xlu1 %v1319_v22  ;;  %2504 = vmatpush3.bf16.msra.mxu1 %v1332_v12 }
0x127b   :  { %2515 = vmatprep.subr.bf16.mxu1 %v2787_v0  ;;  %v1322_v60 = vsel %vm261_vm4, %v2673_v57, 0.0 }
0x127e   :  { %1323 = vadd.xlane.f32.xlu1 %v1322_v60 }
0x1280   :  { %v2675_v23 = vpop.eup %2674 }
0x1281   :  { %v1446_v24 = vsel %vm261_vm4, %v2675_v23, 0.0 }
0x1282   :  { %1447 = vadd.xlane.f32.xlu1 %v1446_v24  ;;  %v2710_v24 = vld [vmem:[#allocation6] sm:$0xff] }
0x1284   :  { %v2677_v25 = vpop.eup %2676 }
0x1285   :  { %v1449_v27 = vsel %vm261_vm4, %v2677_v25, 0.0 }
0x1286   :  { %1450 = vadd.xlane.f32.xlu1 %v1449_v27 }
0x1297   :  { %1457 = vrot.lane.b32.xlu1 %v3148_v26, %s2792_s17 }
0x1307   :  { %v1321_v29 = vpop.xlane.xlu1 %1320 }
0x1308   :  { %2678 = vrcp.f32 %v1321_v29  ;;  %v2711_v29 = vld [vmem:[#allocation6 + $0x8] sm:$0xff] }
0x130b   :  { %v1324_v11 = vpop.xlane.xlu1 %1323 }
0x130c   :  { %2680 = vrcp.f32 %v1324_v11 }
0x130f   :  { %v1448_v30 = vpop.xlane.xlu1 %1447 }
0x1310   :  { %2682 = vrcp.f32 %v1448_v30 }
0x1312   :  { %v2679_v34 = vpop.eup %2678 }
0x1313   :  { %v1451_v33 = vpop.xlane.xlu1 %1450  ;;  %v1327_v37 = vmul.f32 %v2679_v34, %v2671_v16 }
0x1314   :  { %2684 = vrcp.f32 %v1451_v33 }
0x1316   :  { %v2681_v35 = vpop.eup %2680 }
0x1317   :  { %v1328_v38 = vmul.f32 %v2681_v35, %v2673_v57  ;;  %v1458_v40 = vpop.permute.xlu1 %1457 }
0x1319   :  { %v1329_v39 = vpack.c.bf16 %v1328_v38, %v1327_v37 }
0x131a   :  { %v2683_v41 = vpop.eup %2682 }
0x131b   :  { %2506 = vmatmul.mubr.msk.bf16.vlgmr.msra.gmra.mrb[32].mxu1 %vm261_vm4, %v1329_v39  ;;  %v1454_v43 = vmul.f32 %v2683_v41, %v2675_v23 }
0x131c   :  { %2516 = vmatpush3.bf16.msra.mxu1 %v1458_v40  ;;  %2517 = vmatprep.mubr.msk.bf16.mxu1 %vm2788_vm0, %v2787_v0 }
0x131d   :  { %2527 = vmatprep.subr.bf16.mxu1 %v2787_v0 }
0x131e   :  { %v2685_v42 = vpop.eup %2684 }
0x131f   :  { %v1455_v44 = vmul.f32 %v2685_v42, %v2677_v25 }
0x1321   :  { %v1456_v45 = vpack.c.bf16 %v1455_v44, %v1454_v43 }
0x1323   :  { %2518 = vmatmul.mubr.msk.bf16.vlgmr.msra.gmra.mrb[36].mxu1 %vm261_vm4, %v1456_v45 }
0x1324   :  { %2529 = vmatprep.mubr.msk.bf16.mxu1 %vm2788_vm0, %v2787_v0  ;;  %2528 = vmatpush3.bf16.msra.mxu1 %v1556_v47 }
0x1325   :  { %2539 = vmatprep.subr.bf16.mxu1 %v2787_v0 }
0x13ee   :  { %v1371_v50 = vpop.f32.mrb[32].mxu1 }
0x13ef   :  { %v2507_v51 = vpop.f32.mrb[33].mxu1 }
0x13f0   :  { %v1374_v52 = vpop.f32.mrb[34].mxu1 }
0x13f1   :  { %v1378_v6 = vpack.c.bf16 %v1374_v52, %v1371_v50  ;;  %v2508_v7 = vpop.f32.mrb[35].mxu1 }
0x13f3   :  { %2530 = vmatmul.mubr.msk.bf16.vlgmr.msra.gmra.mrb[40].mxu1 %vm208_vm3, %v1378_v6  ;;  %v1780_v6 = vsel %vm212_vm2, %v1775_v49, 0 }
0x13f4   :  { %2541 = vmatprep.mubr.msk.bf16.mxu1 %vm2788_vm0, %v2787_v0 }
0x13f6   :  { %v1497_v53 = vpop.f32.mrb[36].mxu1 }
0x13f7   :  { %v2519_v55 = vpop.f32.mrb[37].mxu1 }
0x13f8   :  { %v1500_v56 = vpop.f32.mrb[38].mxu1 }
0x13f9   :  { %v1504_v61 = vpack.c.bf16 %v1500_v56, %v1497_v53  ;;  %v2520_v31 = vpop.f32.mrb[39].mxu1  ;;  %v2274_v53 = vld [vmem:[%s3349_s4 + $0x18] sm:$0xf] }
0x13fa   :  { %v1727_v54 = vsel %vm212_vm2, %v2274_v53, 0 }
0x13fb   :  { %2524 = vmatmul.mubr.msk.bf16.vlgmr.msra.gmra.mrb[40].mxu0 %vm208_vm3, %v1504_v61 }
0x13fc   :  { %2534 = vmatpush3.bf16.msra.mxu0 %v1605_v62  ;;  %2535 = vmatprep.mubr.msk.bf16.mxu0 %vm2788_vm0, %v2787_v0 }
0x13fd   :  { %2545 = vmatprep.subr.bf16.mxu0 %v2787_v0 }
0x1403   :  { %2536 = vmatmul.mubr.msk.bf16.vlgmr.msra.gmra.mrb[44].mxu0 %vm208_vm3, %v1600_v2 }
0x1404   :  { %2547 = vmatprep.mubr.msk.bf16.mxu0 %vm2788_vm0, %v2787_v0  ;;  %2546 = vmatpush3.bf16.msra.mxu0 %v1727_v54 }
0x1405   :  { %2557 = vmatprep.subr.bf16.mxu0 %v2787_v0 }
0x14c6   :  { %v1592_v58 = vpop.f32.mrb[40].mxu1 }
0x14c7   :  { %v2531_v59 = vpop.f32.mrb[41].mxu1 }
0x14c8   :  { %v1595_v3 = vpop.f32.mrb[42].mxu1 }
0x14c9   :  { %v2532_v36 = vpop.f32.mrb[43].mxu1 }
0x14ce   :  { %v1545_v4 = vpop.f32.mrb[40].mxu0 }
0x14cf   :  { %v3220_v9 = vadd.f32 %v1592_v58, %v1545_v4  ;;  %v2525_v13 = vpop.f32.mrb[41].mxu0 }
0x14d0   :  { %v1548_v14 = vpop.f32.mrb[42].mxu0 }
0x14d1   :  { %v3222_v15 = vadd.f32 %v1595_v3, %v1548_v14  ;;  %v2526_v16 = vpop.f32.mrb[43].mxu0 }
0x14d6   :  { %v1641_v19 = vpop.f32.mrb[44].mxu0 }
0x14d7   :  { %v1648_v12 = vmul.f32 0.35355338, %v1641_v19  ;;  %v2537_v22 = vpop.f32.mrb[45].mxu0 }
0x14d8   :  { %v1644_v57 = vpop.f32.mrb[46].mxu0 }
0x14d9   :  { %v1649_v60 = vmul.f32 0.35355338, %v1644_v57  ;;  %v2538_v23 = vpop.f32.mrb[47].mxu0  ;;  %v1650_v25 = vadd.f32 %v2710_v24, %v1648_v12 }
0x14db   :  { %v1652_v27 = vsel %vm261_vm4, %v1650_v25, -inf  ;;  %v1651_v11 = vadd.f32 %v2711_v29, %v1649_v60 }
0x14dc   :  { %1653 = vmax.xlane.f32.xlu1 %v1652_v27 }
0x14dd   :  { %v1655_v30 = vsel %vm261_vm4, %v1651_v11, -inf }
0x14de   :  { %1656 = vmax.xlane.f32.xlu0 %v1655_v30 }
0x14f4   :  { %1772 = vrot.lane.b32.xlu0 %v3148_v26, %s2794_s23 }
0x1569   :  { %v1654_v33 = vpop.xlane.xlu1 %1653 }
0x156a   :  { %v1658_v34 = vsub.f32 %v1650_v25, %v1654_v33 }
0x156b   :  { %v1657_v35 = vpop.xlane.xlu0 %1656 }
0x156c   :  { %v1660_v37 = vmul.f32 1.442695, %v1658_v34  ;;  %v1659_v38 = vsub.f32 %v1651_v11, %v1657_v35 }
0x156e   :  { %2686 = vpow2.f32 %v1660_v37  ;;  %v1662_v39 = vmul.f32 1.442695, %v1659_v38 }
0x156f   :  { %v1773_v7 = vpop.permute.xlu0 %1772 }
0x1570   :  { %2688 = vpow2.f32 %v1662_v39 }
0x1578   :  { %v2687_v40 = vpop.eup %2686 }
0x1579   :  { %v1664_v41 = vsel %vm261_vm4, %v2687_v40, 0.0 }
0x157a   :  { %v2689_v42 = vpop.eup %2688  ;;  %1665 = vadd.xlane.f32.xlu1 %v1664_v41 }
0x157b   :  { %v1667_v43 = vsel %vm261_vm4, %v2689_v42, 0.0 }
0x157e   :  { %1668 = vadd.xlane.f32.xlu1 %v1667_v43 }
0x158f   :  { %1675 = vrot.lane.b32.xlu1 %v3148_v26, %s2795_s24 }
0x1607   :  { %v1666_v44 = vpop.xlane.xlu1 %1665 }
0x1608   :  { %2690 = vrcp.f32 %v1666_v44 }
0x160b   :  { %v1669_v45 = vpop.xlane.xlu1 %1668 }
0x160c   :  { %2692 = vrcp.f32 %v1669_v45 }
0x160f   :  { %v1676_v46 = vpop.permute.xlu1 %1675 }
0x1610   :  { %2540 = vmatpush3.bf16.msra.mxu1 %v1676_v46 }
0x1611   :  { %2551 = vmatprep.subr.bf16.mxu1 %v2787_v0 }
0x1612   :  { %v2691_v47 = vpop.eup %2690 }
0x1613   :  { %v1672_v50 = vmul.f32 %v2691_v47, %v2687_v40 }
0x1616   :  { %v2693_v48 = vpop.eup %2692 }
0x1617   :  { %v1673_v51 = vmul.f32 %v2693_v48, %v2689_v42 }
0x1619   :  { %v1674_v52 = vpack.c.bf16 %v1673_v51, %v1672_v50  ;;  %v1950_v51 = vrot.slane %v3142_v21, %v904_v28 }
0x161b   :  { %2542 = vmatmul.mubr.msk.bf16.vlgmr.msra.gmra.mrb[44].mxu1 %vm261_vm4, %v1674_v52 }
0x161c   :  { %2552 = vmatpush3.bf16.msra.mxu1 %v1780_v6  ;;  %2553 = vmatprep.mubr.msk.bf16.mxu1 %vm2788_vm0, %v2787_v0 }
0x161d   :  { %2563 = vmatprep.subr.bf16.mxu1 %v2787_v0 }
0x1623   :  { %2554 = vmatmul.mubr.msk.bf16.vlgmr.msra.gmra.mrb[48].mxu1 %vm208_vm3, %v1773_v7 }
0x1624   :  { %2565 = vmatprep.mubr.msk.bf16.mxu1 %vm2788_vm0, %v2787_v0 }
0x16ee   :  { %v1715_v55 = vpop.f32.mrb[44].mxu1 }
0x16ef   :  { %v2543_v56 = vpop.f32.mrb[45].mxu1 }
0x16f0   :  { %v1718_v61 = vpop.f32.mrb[46].mxu1 }
0x16f1   :  { %v1722_v31 = vpack.c.bf16 %v1718_v61, %v1715_v55  ;;  %v2544_v62 = vpop.f32.mrb[47].mxu1 }
0x16f3   :  { %2548 = vmatmul.mubr.msk.bf16.vlgmr.msra.gmra.mrb[48].mxu0 %vm208_vm3, %v1722_v31 }
0x16f4   :  { %2559 = vmatprep.mubr.msk.bf16.mxu0 %vm2788_vm0, %v2787_v0 }
0x16f6   :  { %v1816_v2 = vpop.f32.mrb[48].mxu1 }
0x16f7   :  { %v1823_v58 = vmul.f32 0.35355338, %v1816_v2  ;;  %v2555_v59 = vpop.f32.mrb[49].mxu1 }
0x16f8   :  { %v1819_v3 = vpop.f32.mrb[50].mxu1 }
0x16f9   :  { %v1824_v36 = vmul.f32 0.35355338, %v1819_v3  ;;  %v2556_v4 = vpop.f32.mrb[51].mxu1  ;;  %v1825_v13 = vadd.f32 %v2710_v24, %v1823_v58 }
0x16fb   :  { %v1827_v14 = vsel %vm261_vm4, %v1825_v13, -inf  ;;  %v1826_v16 = vadd.f32 %v2711_v29, %v1824_v36 }
0x16fc   :  { %1828 = vmax.xlane.f32.xlu1 %v1827_v14 }
0x16fd   :  { %v1830_v19 = vsel %vm261_vm4, %v1826_v16, -inf }
0x16fe   :  { %1831 = vmax.xlane.f32.xlu0 %v1830_v19 }
0x1714   :  { %1850 = vrot.lane.b32.xlu0 %v3148_v26, %s2796_s27 }
0x1789   :  { %v1829_v12 = vpop.xlane.xlu1 %1828 }
0x178a   :  { %v1833_v22 = vsub.f32 %v1825_v13, %v1829_v12  ;;  %v2623_v12 = vld [vmem:[%s3350_s5 + $0x18] sm:$0xff]  }
0x178b   :  { %v1832_v57 = vpop.xlane.xlu0 %1831 }
0x178c   :  { %v1835_v60 = vmul.f32 1.442695, %v1833_v22  ;;  %v1834_v23 = vsub.f32 %v1826_v16, %v1832_v57  ;;  %v2624_v22 = vld [vmem:[%s3351_s6 + $0x20] sm:$0xff]   ;;  %v2625_v57 = vld [vmem:[%s3351_s6 + $0x28] sm:$0xff]  }
0x178e   :  { %2694 = vpow2.f32 %v1835_v60  ;;  %v1837_v25 = vmul.f32 1.442695, %v1834_v23 }
0x178f   :  { %v1851_v27 = vpop.permute.xlu0 %1850 }
0x1790   :  { %2696 = vpow2.f32 %v1837_v25  ;;  %2558 = vmatpush3.bf16.msra.mxu0 %v1851_v27 }
0x1791   :  { %2569 = vmatprep.subr.bf16.mxu0 %v2787_v0 }
0x1798   :  { %v2695_v24 = vpop.eup %2694 }
0x1799   :  { %v1839_v29 = vsel %vm261_vm4, %v2695_v24, 0.0 }
0x179a   :  { %v2697_v11 = vpop.eup %2696  ;;  %1840 = vadd.xlane.f32.xlu1 %v1839_v29 }
0x179b   :  { %v1842_v30 = vsel %vm261_vm4, %v2697_v11, 0.0 }
0x179e   :  { %1843 = vadd.xlane.f32.xlu1 %v1842_v30  ;;  %v1984_v30 = vrot.slane %v3142_v21, %v939_v1  ;;  %v2626_v1 = vld [vmem:[%s3351_s6 + $0x30] sm:$0xff]  }
0x17c6   :  { %v1763_v26 = vpop.f32.mrb[48].mxu0 }
0x17c7   :  { %v1770_v33 = vadd.f32 %v1763_v26, %v3220_v9  ;;  %v2549_v34 = vpop.f32.mrb[49].mxu0  ;;  %v2275_v9 = vld [vmem:[%s3349_s4 + $0x1c] sm:$0xf] }
0x17c8   :  { %v1766_v35 = vpop.f32.mrb[50].mxu0 }
0x17c9   :  { %v1771_v37 = vadd.f32 %v1766_v35, %v3222_v15  ;;  %v2550_v38 = vpop.f32.mrb[51].mxu0  ;;  %v1902_v15 = vsel %vm212_vm2, %v2275_v9, 0 }
0x17ca   :  { %2564 = vmatpush3.bf16.msra.mxu1 %v1902_v15 }
0x17cb   :  { %2577 = vmatprep.subr.bf16.mxu1 %v2787_v0 }
0x1827   :  { %v1841_v39 = vpop.xlane.xlu1 %1840 }
0x1828   :  { %2698 = vrcp.f32 %v1841_v39 }
0x182b   :  { %v1844_v40 = vpop.xlane.xlu1 %1843 }
0x182c   :  { %2700 = vrcp.f32 %v1844_v40 }
0x1832   :  { %v2699_v41 = vpop.eup %2698 }
0x1833   :  { %v1847_v43 = vmul.f32 %v2699_v41, %v2695_v24 }
0x1836   :  { %v2701_v42 = vpop.eup %2700 }
0x1837   :  { %v1848_v44 = vmul.f32 %v2701_v42, %v2697_v11  ;;  %v1997_v42 = vrot.slane %v3142_v21, %v952_v20 }
0x1839   :  { %v1849_v45 = vpack.c.bf16 %v1848_v44, %v1847_v43 }
0x183b   :  { %2560 = vmatmul.mubr.msk.bf16.vlgmr.msra.gmra.mrb[52].mxu0 %vm261_vm4, %v1849_v45 }
0x183c   :  { %2573 = vmatprep.mubr.msk.bf16.mxu0 %vm2788_vm0, %v2787_v0 }
0x190e   :  { %v1890_v46 = vpop.f32.mrb[52].mxu0 }
0x190f   :  { %v2561_v47 = vpop.f32.mrb[53].mxu0 }
0x1910   :  { %v1893_v48 = vpop.f32.mrb[54].mxu0 }
0x1911   :  { %v1897_v49 = vpack.c.bf16 %v1893_v48, %v1890_v46  ;;  %v2562_v50 = vpop.f32.mrb[55].mxu0 }
0x1912   :  { %v2060_v50 = vrot.slane %v3142_v21, %v1015_v32 }
0x1913   :  { %2566 = vmatmul.mubr.msk.bf16.vlgmr.msra.gmra.mrb[52].mxu1 %vm208_vm3, %v1897_v49 }
0x1914   :  { %2585 = vmatprep.mubr.msk.bf16.mxu1 %vm2788_vm0, %v2787_v0  ;;  %2578 = vmatpush3.bf16.msra.mxu1 %v2624_v22 }
0x1915   :  { %2579 = vmatprep.subr.bf16.mxu1 %v2787_v0 }
0x1918   :  { %2580 = vmatpush3.bf16.msra.mxu1 %v2625_v57 }
0x1919   :  { %2581 = vmatprep.subr.bf16.mxu1 %v2787_v0 }
0x191c   :  { %2582 = vmatpush3.bf16.msra.mxu1 %v2626_v1 }
0x191d   :  { %2583 = vmatprep.subr.bf16.mxu1 %v2787_v0 }
0x19e6   :  { %v1938_v52 = vpop.f32.mrb[52].mxu1 }
0x19e7   :  { %v1945_v6 = vadd.f32 %v1938_v52, %v1770_v33  ;;  %v2567_v7 = vpop.f32.mrb[53].mxu1 }
0x19e8   :  { %v1941_v53 = vpop.f32.mrb[54].mxu1 }
0x19e9   :  { %v1951_v54 = vadd.f32 %v1950_v51, %v1945_v6  ;;  %v1946_v55 = vadd.f32 %v1941_v53, %v1771_v37  ;;  %v2568_v56 = vpop.f32.mrb[55].mxu1  ;;  %v1990_v37 = vrot.slane %v3142_v21, %v945_v5  ;;  %v2627_v5 = vld [vmem:[%s3351_s6 + $0x38] sm:$0xff]  }
0x19ea   :  { %2584 = vmatpush3.bf16.msra.mxu1 %v2627_v5 }
0x19eb   :  { %v1952_v61 = vadd.f32 %v1950_v51, %v1946_v55  ;;  %v1953_v31 = vadd.f32 %v1951_v54, %v3130_v17 }
0x19ed   :  { %v1955_v62 = vsel %vm120_vm1, %v1953_v31, 0.0  ;;  %v1954_v2 = vadd.f32 %v1952_v61, %v3132_v18  ;;  %v2622_v18 = vld [vmem:[%s3350_s5 + $0x10] sm:$0xff]  }
0x19ee   :  { %1956 = vadd.xlane.f32.xlu1 %v1955_v62  ;;  %2570 = vmatpush3.bf16.msra.mxu0 %v2622_v18 }
0x19ef   :  { %v1958_v58 = vsel %vm120_vm1, %v1954_v2, 0.0  ;;  %2571 = vmatprep.subr.bf16.mxu0 %v2787_v0 }
0x19f2   :  { %1959 = vadd.xlane.f32.xlu1 %v1958_v58  ;;  %2572 = vmatpush3.bf16.msra.mxu0 %v2623_v12 }
0x19f3   :  { %2589 = vmatprep.subr.bf16.mxu0 %v2787_v0 }
0x1a7b   :  { %v1957_v59 = vpop.xlane.xlu1 %1956 }
0x1a7c   :  { %v1961_v28 = vmul.f32 0.03125, %v1957_v59 }
0x1a7e   :  { %v1963_v3 = vsub.f32 %v1953_v31, %v1961_v28 }
0x1a7f   :  { %v1960_v36 = vpop.xlane.xlu1 %1959 }
0x1a80   :  { %v1962_v4 = vmul.f32 0.03125, %v1960_v36  ;;  %v1965_v13 = vmul.f32 %v1963_v3, %v1963_v3 }
0x1a82   :  { %v1964_v14 = vsub.f32 %v1954_v2, %v1962_v4  ;;  %v1967_v16 = vsel %vm120_vm1, %v1965_v13, 0.0  ;;  %v2628_v13 = vld [vmem:[%s3353_s8] sm:$0xff]  }
0x1a83   :  { %1968 = vadd.xlane.f32.xlu1 %v1967_v16 }
0x1a84   :  { %v1966_v19 = vmul.f32 %v1964_v14, %v1964_v14 }
0x1a86   :  { %v1970_v17 = vsel %vm120_vm1, %v1966_v19, 0.0 }
0x1a87   :  { %1971 = vadd.xlane.f32.xlu1 %v1970_v17 }
0x1b10   :  { %v1969_v60 = vpop.xlane.xlu1 %1968 }
0x1b11   :  { %v1973_v23 = vmul.f32 0.03125, %v1969_v60  ;;  %v2160_v60 = vrot.slane %v3142_v21, %v1116_v63 }
0x1b13   :  { %v1975_v25 = vadd.f32 1e-05, %v1973_v23 }
0x1b14   :  { %v1972_v27 = vpop.xlane.xlu1 %1971 }
0x1b15   :  { %2702 = vrsqrt.f32 %v1975_v25  ;;  %v1974_v24 = vmul.f32 0.03125, %v1972_v27 }
0x1b17   :  { %v1976_v29 = vadd.f32 1e-05, %v1974_v24 }
0x1b19   :  { %2704 = vrsqrt.f32 %v1976_v29 }
0x1b1f   :  { %v2703_v11 = vpop.eup %2702 }
0x1b20   :  { %v1979_v26 = vmul.f32 %v2703_v11, %v1963_v3 }
0x1b22   :  { %v1985_v34 = vmul.f32 %v1984_v30, %v1979_v26 }
0x1b23   :  { %v2705_v33 = vpop.eup %2704 }
0x1b24   :  { %v1980_v35 = vmul.f32 %v2705_v33, %v1964_v14  ;;  %v1991_v39 = vadd.f32 %v1990_v37, %v1985_v34  ;;  %v2629_v14 = vld [vmem:[%s3353_s8 + $0x8] sm:$0xff]   ;;  %v2312_v33 = vld [vmem:[%s3354_s9] ss:$0 sm:$0xff] }
0x1b26   :  { %v1986_v38 = vmul.f32 %v1984_v30, %v1980_v35 }
0x1b28   :  { %v1992_v40 = vadd.f32 %v1990_v37, %v1986_v38 }
0x1b2a   :  { %v1993_v41 = vpack.c.bf16 %v1992_v40, %v1991_v39 }
0x1b2c   :  { %2574 = vmatmul.mubr.msk.bf16.vlgmr.msra.gmra.mrb[56].mxu0 %vm120_vm1, %v1993_v41 }
0x1b2d   :  { %2593 = vmatprep.mubr.msk.bf16.mxu0 %vm2788_vm0, %v2787_v0  ;;  %2590 = vmatpush3.bf16.msra.mxu0 %v2628_v13 }
0x1b2e   :  { %2591 = vmatprep.subr.bf16.mxu0 %v2787_v0  ;;  %v2166_v0 = vrot.slane %v3142_v21, %v1122_v8 }
0x1b31   :  { %2592 = vmatpush3.bf16.msra.mxu0 %v2629_v14 }
0x1bff   :  { %v2047_v43 = vpop.f32.mrb[56].mxu0 }
0x1c00   :  { %v2048_v44 = vadd.f32 %v2047_v43, %v1997_v42  ;;  %v2575_v45 = vpop.f32.mrb[57].mxu0 }
0x1c01   :  { %v2050_v9 = vpop.f32.mrb[58].mxu0 }
0x1c02   :  { %v2051_v15 = vadd.f32 %v2050_v9, %v1997_v42  ;;  %v2576_v46 = vpop.f32.mrb[59].mxu0  ;;  %v2054_v47 = vmax.f32 %v2048_v44, 0.0 }
0x1c04   :  { %v2055_v48 = vmax.f32 %v2051_v15, 0.0 }
0x1c06   :  { %v2056_v49 = vpack.c.bf16 %v2055_v48, %v2054_v47 }
0x1c08   :  { %2586 = vmatmul.mubr.msk.bf16.vlgmr.msra.gmra.mrb[56].mxu1 %vm1041_vm5, %v2056_v49 }
0x1cdb   :  { %v2122_v51 = vpop.f32.mrb[56].mxu1 }
0x1cdc   :  { %v2123_v52 = vadd.f32 %v2122_v51, %v2060_v50  ;;  %v2587_v6 = vpop.f32.mrb[57].mxu1 }
0x1cdd   :  { %v2125_v7 = vpop.f32.mrb[58].mxu1 }
0x1cde   :  { %v2126_v20 = vadd.f32 %v2125_v7, %v2060_v50  ;;  %v2588_v53 = vpop.f32.mrb[59].mxu1  ;;  %v2129_v54 = vadd.f32 %v2123_v52, %v1991_v39 }
0x1ce0   :  { %v2131_v55 = vsel %vm120_vm1, %v2129_v54, 0.0  ;;  %v2130_v56 = vadd.f32 %v2126_v20, %v1992_v40 }
0x1ce1   :  { %2132 = vadd.xlane.f32.xlu1 %v2131_v55 }
0x1ce2   :  { %v2134_v61 = vsel %vm120_vm1, %v2130_v56, 0.0 }
0x1ce5   :  { %2135 = vadd.xlane.f32.xlu1 %v2134_v61 }
0x1d6e   :  { %v2133_v31 = vpop.xlane.xlu1 %2132 }
0x1d6f   :  { %v2137_v62 = vmul.f32 0.03125, %v2133_v31 }
0x1d71   :  { %v2139_v2 = vsub.f32 %v2129_v54, %v2137_v62 }
0x1d72   :  { %v2136_v58 = vpop.xlane.xlu1 %2135 }
0x1d73   :  { %v2138_v59 = vmul.f32 0.03125, %v2136_v58  ;;  %v2141_v32 = vmul.f32 %v2139_v2, %v2139_v2 }
0x1d75   :  { %v2140_v28 = vsub.f32 %v2130_v56, %v2138_v59  ;;  %v2143_v3 = vsel %vm120_vm1, %v2141_v32, 0.0 }
0x1d76   :  { %2144 = vadd.xlane.f32.xlu0 %v2143_v3 }
0x1d77   :  { %v2142_v36 = vmul.f32 %v2140_v28, %v2140_v28 }
0x1d79   :  { %v2146_v4 = vsel %vm120_vm1, %v2142_v36, 0.0 }
0x1d7a   :  { %2147 = vadd.xlane.f32.xlu1 %v2146_v4 }
0x1e03   :  { %v2145_v16 = vpop.xlane.xlu0 %2144 }
0x1e04   :  { %v2149_v19 = vmul.f32 0.03125, %v2145_v16 }
0x1e06   :  { %v2151_v17 = vadd.f32 1e-05, %v2149_v19 }
0x1e07   :  { %v2148_v18 = vpop.xlane.xlu1 %2147 }
0x1e08   :  { %2706 = vrsqrt.f32 %v2151_v17  ;;  %v2150_v12 = vmul.f32 0.03125, %v2148_v18 }
0x1e0a   :  { %v2152_v22 = vadd.f32 1e-05, %v2150_v12 }
0x1e0c   :  { %2708 = vrsqrt.f32 %v2152_v22 }
0x1e12   :  { %v2707_v57 = vpop.eup %2706 }
0x1e13   :  { %v2155_v23 = vmul.f32 %v2707_v57, %v2139_v2 }
0x1e15   :  { %v2161_v27 = vmul.f32 %v2160_v60, %v2155_v23 }
0x1e16   :  { %v2709_v25 = vpop.eup %2708 }
0x1e17   :  { %v2156_v24 = vmul.f32 %v2709_v25, %v2140_v28  ;;  %v2167_v11 = vadd.f32 %v2166_v0, %v2161_v27 }
0x1e19   :  { %v2162_v29 = vmul.f32 %v2160_v60, %v2156_v24 }
0x1e1b   :  { %v2168_v30 = vadd.f32 %v2166_v0, %v2162_v29 }
0x1e1d   :  { %v2169_v26 = vpack.c.bf16 %v2168_v30, %v2167_v11 }
0x1e1f   :  { %2594 = vmatmul.mubr.msk.bf16.vlgmr.msra.gmra.mrb[60].mxu0 %vm120_vm1, %v2169_v26 }
0x1ef2   :  { %v2230_v34 = vpop.f32.mrb[60].mxu0 }
0x1ef3   :  { %v2231_v63 = vadd.f32 %v2312_v33, %v2230_v34  ;;  %v2595_v35 = vpop.f32.mrb[61].mxu0 }
0x1ef4   :  { %v2233_v37 = vpop.f32.mrb[62].mxu0 }
0x1ef5   :  { %2237 = vst [vmem:[%s3355_s10] sm:$0xff] %v2231_v63  ;;  %v2234_v10 = vadd.f32 %v2312_v33, %v2233_v37  ;;  %v2596_v8 = vpop.f32.mrb[63].mxu0 }
0x1ef7   :  { %2238 = vst [vmem:[%s3355_s10 + $0x8] sm:$0xff] %v2234_v10 }
0x1ef8   :  { %2243 = vsyncpa [#allocation3], 1 }
0x1ef9   :  { %2244 = vsyncpa [#allocation5], 1 }

</bundles_post_ra>
